<compile_context>
chip_gen: v7x
topology: tpu7x:2x2x1
jax: 0.10.0
libtpu: 0.0.40
codegen_flags: <defaults>
</compile_context>

<pallas_src>
import functools

import jax
import jax.numpy as jnp
from jax.experimental import pallas as pl
from jax.experimental.pallas import tpu as pltpu


def _round_up(x, m):
    return ((x + m - 1) // m) * m


def _resconv_kernel(xpad_ref,    # VMEM (Bt, T+2*pad, Dinp)  compute_dtype, halo already zero
                    invlen_ref,  # VMEM (Bt, 1)              f32  (1 / length)
                    w1_ref,      # VMEM (K*Dinp, Hp)         compute_dtype
                    b1_ref,      # VMEM (1, Hp)              f32
                    wr_ref,      # VMEM (n_res_eff, K*Hp, Hp) compute_dtype
                    br_ref,      # VMEM (n_res_eff, 1, Hp)   f32
                    out_ref,     # VMEM (Bt, 2*Hp)           f32  [:Hp]=max, [Hp:]=mean
                    hbuf_ref,    # VMEM scratch (Bt, T+2*pad, Hp) compute_dtype
                    *, T, pad, n_res):
    Bt = xpad_ref.shape[0]
    K = 2 * pad + 1
    Hp = w1_ref.shape[-1]

    # ---- layer 0: relu(conv(x)) ------------------------------------------------
    # K taps sliced directly from the host-padded, host-cast x block; one wide MXU
    # matmul with contraction K*Dinp and M = Bt*T, f32 accumulation.
    a0 = jnp.concatenate([xpad_ref[:, k:k + T, :] for k in range(K)], axis=-1)
    y0 = jnp.dot(a0.reshape(Bt * T, K * xpad_ref.shape[-1]), w1_ref[...],
                 preferred_element_type=jnp.float32).reshape(Bt, T, Hp)
    h = jnp.maximum(y0 + b1_ref[...], 0.0)                    # f32 (Bt, T, Hp)

    # ---- residual blocks: h = h + relu(conv(h)) ---------------------------------
    if n_res > 0:
        if pad > 0:
            # zero the time halo once per grid step; the interior is rewritten below
            hbuf_ref[:, :pad, :] = jnp.zeros((Bt, pad, Hp), hbuf_ref.dtype)
            hbuf_ref[:, pad + T:, :] = jnp.zeros((Bt, pad, Hp), hbuf_ref.dtype)
        for l in range(n_res):
            # the bf16 store into the scratch interior *is* the matmul-operand cast
            hbuf_ref[:, pad:pad + T, :] = h.astype(hbuf_ref.dtype)
            a = jnp.concatenate([hbuf_ref[:, k:k + T, :] for k in range(K)], axis=-1)
            y = jnp.dot(a.reshape(Bt * T, K * Hp), wr_ref[l],
                        preferred_element_type=jnp.float32).reshape(Bt, T, Hp)
            h = h + jnp.maximum(y + br_ref[l], 0.0)

    # ---- pools ------------------------------------------------------------------
    # MaxPool1D: unmasked max over T (the module calls max_pool(outputs) w/o lengths).
    mx = jnp.max(h, axis=1)                                    # (Bt, Hp)
    # MeanPool1D: sum over T times precomputed 1/length.
    mu = jnp.sum(h, axis=1) * invlen_ref[...]                  # (Bt, Hp)

    # Single lane-dense block store (Bt, 2*Hp).
    out_ref[...] = jnp.concatenate([mx, mu], axis=-1).astype(out_ref.dtype)


def residual_conv_pool(x, lengths, W1, b1, Wr, br, filtsz, *,
                       batch_tile=8, compute_dtype=jnp.bfloat16,
                       vmem_limit_bytes=None):
    """x: (B, T, Din) f32, lengths: (B,) int. Returns (B, 2*H) f32 = [max_pool, mean_pool].

    W1: (K, Din, H), b1: (1, H), Wr: (n_res, K, H, H), br: (n_res, 1, H).
    """
    B, T, Din = x.shape
    H = W1.shape[-1]
    K = filtsz
    n_res = Wr.shape[0]
    n_res_eff = max(n_res, 1)
    pad = K // 2
    Tp = T + 2 * pad

    # Lane-align channel dims (zero-padded channels are a numerical no-op).
    Dinp = _round_up(Din, 128)
    Hp = _round_up(H, 128)

    # Batch tile: multiple of 8, no larger than the (sublane-rounded) batch.
    Bt = _round_up(max(1, batch_tile), 8)
    Bt = min(Bt, _round_up(B, 8))
    Bp = _round_up(B, Bt)

    cd = jnp.dtype(compute_dtype)

    # ---- host-side prep (pad + cast once, outside the kernel) --------------------
    # x: pad batch, time halo and channels; cast to compute_dtype.
    xp = jnp.pad(x.astype(cd), ((0, Bp - B), (pad, pad), (0, Dinp - Din)))

    # 1/length, guarded against zero-length sequences; padded rows get length 1.
    lens = jnp.concatenate(
        [lengths, jnp.ones((Bp - B,), lengths.dtype)], axis=0) if Bp != B else lengths
    inv_len = (1.0 / jnp.maximum(lens, 1).astype(jnp.float32)).reshape(Bp, 1)

    # Weights: pad channels, fold the K taps into the contraction dim, cast once.
    W1p = jnp.zeros((K, Dinp, Hp), cd).at[:, :Din, :H].set(W1.astype(cd))
    W1f = W1p.reshape(K * Dinp, Hp)
    b1p = jnp.zeros((1, Hp), jnp.float32).at[:, :H].set(b1.astype(jnp.float32))
    Wrp = jnp.zeros((n_res_eff, K, Hp, Hp), cd)
    brp = jnp.zeros((n_res_eff, 1, Hp), jnp.float32)
    if n_res > 0:
        Wrp = Wrp.at[:, :, :H, :H].set(Wr.astype(cd))
        brp = brp.at[:, :, :H].set(br.astype(jnp.float32))
    Wrf = Wrp.reshape(n_res_eff, K * Hp, Hp)

    # ---- VMEM budget: derive from the actual working set (double-buffered inputs) --
    if vmem_limit_bytes is None:
        cb = cd.itemsize
        ws = (2 * Bt * Tp * Dinp * cb                                  # x tile
              + 2 * (K * Dinp * Hp + n_res_eff * K * Hp * Hp) * cb     # weights
              + 2 * (Hp + n_res_eff * Hp) * 4                          # biases
              + 2 * (Bt * 2 * Hp) * 4 + 2 * Bt * 4                     # out / invlen
              + Bt * Tp * Hp * cb                                      # h scratch
              + Bt * T * K * max(Dinp, Hp) * cb                        # im2col
              + 4 * Bt * T * Hp * 4)                                   # f32 temporaries
        vmem_limit_bytes = int(min(100 * 1024 * 1024,
                                   max(32 * 1024 * 1024, 2 * ws)))

    kernel = functools.partial(_resconv_kernel, T=T, pad=pad, n_res=n_res)

    grid_spec = pltpu.PrefetchScalarGridSpec(
        num_scalar_prefetch=0,
        grid=(Bp // Bt,),
        in_specs=[
            pl.BlockSpec((Bt, Tp, Dinp), lambda i: (i, 0, 0)),
            pl.BlockSpec((Bt, 1), lambda i: (i, 0)),
            pl.BlockSpec((K * Dinp, Hp), lambda i: (0, 0)),
            pl.BlockSpec((1, Hp), lambda i: (0, 0)),
            pl.BlockSpec((n_res_eff, K * Hp, Hp), lambda i: (0, 0, 0)),
            pl.BlockSpec((n_res_eff, 1, Hp), lambda i: (0, 0, 0)),
        ],
        out_specs=pl.BlockSpec((Bt, 2 * Hp), lambda i: (i, 0)),
        scratch_shapes=[pltpu.VMEM((Bt, Tp, Hp), cd)],
    )

    out = pl.pallas_call(
        kernel,
        out_shape=jax.ShapeDtypeStruct((Bp, 2 * Hp), jnp.float32),
        grid_spec=grid_spec,
        compiler_params=pltpu.CompilerParams(
            dimension_semantics=("parallel",),
            vmem_limit_bytes=vmem_limit_bytes),
    )(xp, inv_len, W1f, b1p, Wrf, brp)

    # (Bp, 2*Hp) -> (B, 2H) == concat([max, mean], -1), dropping padded channels/rows.
    return jnp.concatenate([out[:B, :H], out[:B, Hp:Hp + H]], axis=-1)


def reference(x, lengths, W1, b1, Wr, br, filtsz):
    """Pure-JAX reference (explicit zero-padding conv path)."""
    pad = filtsz // 2
    T = x.shape[1]

    def conv(h, W, b):
        hp = jnp.pad(h, ((0, 0), (pad, pad), (0, 0)))
        acc = jnp.zeros(h.shape[:2] + (W.shape[-1],), jnp.float32)
        for k in range(filtsz):
            acc = acc + jnp.einsum('btc,cd->btd', hp[:, k:k + T, :], W[k])
        return acc + b[0]

    h = jax.nn.relu(conv(x, W1, b1))
    for l in range(Wr.shape[0]):
        h = h + jax.nn.relu(conv(h, Wr[l], br[l]))
    mx = jnp.max(h, axis=1)
    mu = jnp.sum(h, axis=1) / lengths.astype(jnp.float32)[:, None]
    return jnp.concatenate([mx, mu], axis=-1)


if __name__ == "__main__":
    B, T, Din, H, K, NLAYERS = 2, 8, 4, 32, 3, 3
    n_res = NLAYERS - 1

    key = jax.random.PRNGKey(0)
    k1, k2, k3, k4, k5 = jax.random.split(key, 5)

    x = jax.random.normal(k1, (B, T, Din), jnp.float32)
    lengths = jnp.array([T, 5], jnp.int32)
    # zero out padded timesteps to mimic padded sequences
    mask = (jnp.arange(T)[None, :] < lengths[:, None]).astype(jnp.float32)
    x = x * mask[:, :, None]

    # deterministic synthetic Conv1d parameters
    W1 = 0.2 * jax.random.normal(k2, (K, Din, H), jnp.float32)
    b1 = 0.1 * jax.random.normal(k3, (1, H), jnp.float32)
    Wr = 0.2 * jax.random.normal(k4, (n_res, K, H, H), jnp.float32)
    br = 0.1 * jax.random.normal(k5, (n_res, 1, H), jnp.float32)

    ref = reference(x, lengths, W1, b1, Wr, br, K)

    # f32 matmul-operand path (exact check)
    out_f32 = residual_conv_pool(x, lengths, W1, b1, Wr, br, K,
                                 compute_dtype=jnp.float32)
    out_f32 = jax.block_until_ready(out_f32)
    assert out_f32.shape == (B, 2 * H), out_f32.shape
    assert jnp.allclose(out_f32, ref, atol=1e-4, rtol=1e-4), (out_f32, ref)

    # default bf16 matmul-operand path (MXU-native on v5e/v6e/v7x), loose tolerance
    out_bf16 = residual_conv_pool(x, lengths, W1, b1, Wr, br, K)
    out_bf16 = jax.block_until_ready(out_bf16)
    assert out_bf16.shape == (B, 2 * H), out_bf16.shape
    assert jnp.allclose(out_bf16, ref, atol=1e-1, rtol=1e-1), (out_bf16, ref)

    print("KERNEL_OK")
</pallas_src>

<mosaic_0001>
module attributes {stable_mosaic.version = 11 : i64} {
  func.func @_resconv_kernel(%arg0: i32, %arg1: memref<8x10x128xf32, #tpu.memory_space<vmem>>, %arg2: memref<8x1xf32, #tpu.memory_space<vmem>>, %arg3: memref<384x128xf32, #tpu.memory_space<vmem>>, %arg4: memref<1x128xf32, #tpu.memory_space<vmem>>, %arg5: memref<2x384x128xf32, #tpu.memory_space<vmem>>, %arg6: memref<2x1x128xf32, #tpu.memory_space<vmem>>, %arg7: memref<8x256xf32, #tpu.memory_space<vmem>>, %arg8: memref<8x10x128xf32, #tpu.memory_space<vmem>>) attributes {dimension_semantics = [#tpu.dimension_semantics<parallel>], iteration_bounds = array<i64: 1>, scalar_prefetch = 0 : i64, scratch_operands = 1 : i64, tpu.core_type = #tpu.core_type<tc>, window_params = [{transform_indices = @transform_0, window_bounds = array<i64: 8, 10, 128>}, {transform_indices = @transform_1, window_bounds = array<i64: 8, 1>}, {pipeline_mode = #tpu.pipeline_mode<synchronous>, transform_indices = @transform_2, window_bounds = array<i64: 384, 128>}, {pipeline_mode = #tpu.pipeline_mode<synchronous>, transform_indices = @transform_3, window_bounds = array<i64: 1, 128>}, {pipeline_mode = #tpu.pipeline_mode<synchronous>, transform_indices = @transform_4, window_bounds = array<i64: 2, 384, 128>}, {pipeline_mode = #tpu.pipeline_mode<synchronous>, transform_indices = @transform_5, window_bounds = array<i64: 2, 1, 128>}, {transform_indices = @transform_6, window_bounds = array<i64: 8, 256>}]} {
    %c0 = arith.constant 0 : index
    %c0_0 = arith.constant 0 : index
    %c0_1 = arith.constant 0 : index
    %0 = vector.load %arg1[%c0, %c0_0, %c0_1] : memref<8x10x128xf32, #tpu.memory_space<vmem>>, vector<8x8x128xf32>
    %c0_2 = arith.constant 0 : index
    %c1 = arith.constant 1 : index
    %c0_3 = arith.constant 0 : index
    %1 = vector.load %arg1[%c0_2, %c1, %c0_3] : memref<8x10x128xf32, #tpu.memory_space<vmem>>, vector<8x8x128xf32>
    %c0_4 = arith.constant 0 : index
    %c2 = arith.constant 2 : index
    %c0_5 = arith.constant 0 : index
    %2 = vector.load %arg1[%c0_4, %c2, %c0_5] : memref<8x10x128xf32, #tpu.memory_space<vmem>>, vector<8x8x128xf32>
    %3 = tpu.concatenate %0, %1, %2 in 2 : vector<8x8x128xf32>, vector<8x8x128xf32>, vector<8x8x128xf32> -> vector<8x8x384xf32>
    %4 = vector.shape_cast %3 : vector<8x8x384xf32> to vector<64x384xf32>
    %c0_6 = arith.constant 0 : index
    %c0_7 = arith.constant 0 : index
    %5 = vector.load %arg3[%c0_6, %c0_7] : memref<384x128xf32, #tpu.memory_space<vmem>>, vector<384x128xf32>
    %cst = arith.constant dense<0.000000e+00> : vector<64x128xf32>
    %6 = tpu.matmul %4, %5, %cst {dimension_numbers = #tpu.dot_dimension_numbers<[1], [0], [0], [1], [0, 0, 1, 1], [], []>} : vector<64x384xf32>, vector<384x128xf32>, vector<64x128xf32> -> vector<64x128xf32>
    %7 = vector.shape_cast %6 : vector<64x128xf32> to vector<8x8x128xf32>
    %c0_8 = arith.constant 0 : index
    %c0_9 = arith.constant 0 : index
    %8 = vector.load %arg4[%c0_8, %c0_9] : memref<1x128xf32, #tpu.memory_space<vmem>>, vector<1x128xf32>
    %9 = vector.shape_cast %8 : vector<1x128xf32> to vector<1x1x128xf32>
    %10 = vector.broadcast %9 : vector<1x1x128xf32> to vector<8x8x128xf32>
    %11 = arith.addf %7, %10 : vector<8x8x128xf32>
    %cst_10 = arith.constant 0.000000e+00 : f32
    %12 = vector.broadcast %cst_10 : f32 to vector<8x8x128xf32>
    %13 = arith.maximumf %11, %12 : vector<8x8x128xf32>
    %cst_11 = arith.constant 0.000000e+00 : f32
    %14 = vector.broadcast %cst_11 : f32 to vector<8x1x128xf32>
    %c0_12 = arith.constant 0 : index
    %c0_13 = arith.constant 0 : index
    %c0_14 = arith.constant 0 : index
    %15 = vector.load %arg8[%c0_12, %c0_13, %c0_14] : memref<8x10x128xf32, #tpu.memory_space<vmem>>, vector<8x1x128xf32>
    tpu.vector_store %arg8[%c0_12, %c0_13, %c0_14], %14 {strides = array<i32>} : memref<8x10x128xf32, #tpu.memory_space<vmem>>, vector<8x1x128xf32>,
    %cst_15 = arith.constant 0.000000e+00 : f32
    %16 = vector.broadcast %cst_15 : f32 to vector<8x1x128xf32>
    %c0_16 = arith.constant 0 : index
    %c9 = arith.constant 9 : index
    %c0_17 = arith.constant 0 : index
    %17 = vector.load %arg8[%c0_16, %c9, %c0_17] : memref<8x10x128xf32, #tpu.memory_space<vmem>>, vector<8x1x128xf32>
    tpu.vector_store %arg8[%c0_16, %c9, %c0_17], %16 {strides = array<i32>} : memref<8x10x128xf32, #tpu.memory_space<vmem>>, vector<8x1x128xf32>,
    %c0_18 = arith.constant 0 : index
    %c1_19 = arith.constant 1 : index
    %c0_20 = arith.constant 0 : index
    %18 = vector.load %arg8[%c0_18, %c1_19, %c0_20] : memref<8x10x128xf32, #tpu.memory_space<vmem>>, vector<8x8x128xf32>
    tpu.vector_store %arg8[%c0_18, %c1_19, %c0_20], %13 {strides = array<i32>} : memref<8x10x128xf32, #tpu.memory_space<vmem>>, vector<8x8x128xf32>,
    %c0_21 = arith.constant 0 : index
    %c0_22 = arith.constant 0 : index
    %c0_23 = arith.constant 0 : index
    %19 = vector.load %arg8[%c0_21, %c0_22, %c0_23] : memref<8x10x128xf32, #tpu.memory_space<vmem>>, vector<8x8x128xf32>
    %c0_24 = arith.constant 0 : index
    %c1_25 = arith.constant 1 : index
    %c0_26 = arith.constant 0 : index
    %20 = vector.load %arg8[%c0_24, %c1_25, %c0_26] : memref<8x10x128xf32, #tpu.memory_space<vmem>>, vector<8x8x128xf32>
    %c0_27 = arith.constant 0 : index
    %c2_28 = arith.constant 2 : index
    %c0_29 = arith.constant 0 : index
    %21 = vector.load %arg8[%c0_27, %c2_28, %c0_29] : memref<8x10x128xf32, #tpu.memory_space<vmem>>, vector<8x8x128xf32>
    %22 = tpu.concatenate %19, %20, %21 in 2 : vector<8x8x128xf32>, vector<8x8x128xf32>, vector<8x8x128xf32> -> vector<8x8x384xf32>
    %23 = vector.shape_cast %22 : vector<8x8x384xf32> to vector<64x384xf32>
    %c0_30 = arith.constant 0 : index
    %c0_31 = arith.constant 0 : index
    %c0_32 = arith.constant 0 : index
    %24 = vector.load %arg5[%c0_30, %c0_31, %c0_32] : memref<2x384x128xf32, #tpu.memory_space<vmem>>, vector<1x384x128xf32>
    %25 = vector.shape_cast %24 : vector<1x384x128xf32> to vector<384x128xf32>
    %cst_33 = arith.constant dense<0.000000e+00> : vector<64x128xf32>
    %26 = tpu.matmul %23, %25, %cst_33 {dimension_numbers = #tpu.dot_dimension_numbers<[1], [0], [0], [1], [0, 0, 1, 1], [], []>} : vector<64x384xf32>, vector<384x128xf32>, vector<64x128xf32> -> vector<64x128xf32>
    %27 = vector.shape_cast %26 : vector<64x128xf32> to vector<8x8x128xf32>
    %c0_34 = arith.constant 0 : index
    %c0_35 = arith.constant 0 : index
    %c0_36 = arith.constant 0 : index
    %28 = vector.load %arg6[%c0_34, %c0_35, %c0_36] : memref<2x1x128xf32, #tpu.memory_space<vmem>>, vector<1x1x128xf32>
    %29 = vector.shape_cast %28 : vector<1x1x128xf32> to vector<1x128xf32>
    %30 = vector.shape_cast %29 : vector<1x128xf32> to vector<1x1x128xf32>
    %31 = vector.broadcast %30 : vector<1x1x128xf32> to vector<8x8x128xf32>
    %32 = arith.addf %27, %31 : vector<8x8x128xf32>
    %cst_37 = arith.constant 0.000000e+00 : f32
    %33 = vector.broadcast %cst_37 : f32 to vector<8x8x128xf32>
    %34 = arith.maximumf %32, %33 : vector<8x8x128xf32>
    %35 = arith.addf %13, %34 : vector<8x8x128xf32>
    %c0_38 = arith.constant 0 : index
    %c1_39 = arith.constant 1 : index
    %c0_40 = arith.constant 0 : index
    %36 = vector.load %arg8[%c0_38, %c1_39, %c0_40] : memref<8x10x128xf32, #tpu.memory_space<vmem>>, vector<8x8x128xf32>
    tpu.vector_store %arg8[%c0_38, %c1_39, %c0_40], %35 {strides = array<i32>} : memref<8x10x128xf32, #tpu.memory_space<vmem>>, vector<8x8x128xf32>,
    %c0_41 = arith.constant 0 : index
    %c0_42 = arith.constant 0 : index
    %c0_43 = arith.constant 0 : index
    %37 = vector.load %arg8[%c0_41, %c0_42, %c0_43] : memref<8x10x128xf32, #tpu.memory_space<vmem>>, vector<8x8x128xf32>
    %c0_44 = arith.constant 0 : index
    %c1_45 = arith.constant 1 : index
    %c0_46 = arith.constant 0 : index
    %38 = vector.load %arg8[%c0_44, %c1_45, %c0_46] : memref<8x10x128xf32, #tpu.memory_space<vmem>>, vector<8x8x128xf32>
    %c0_47 = arith.constant 0 : index
    %c2_48 = arith.constant 2 : index
    %c0_49 = arith.constant 0 : index
    %39 = vector.load %arg8[%c0_47, %c2_48, %c0_49] : memref<8x10x128xf32, #tpu.memory_space<vmem>>, vector<8x8x128xf32>
    %40 = tpu.concatenate %37, %38, %39 in 2 : vector<8x8x128xf32>, vector<8x8x128xf32>, vector<8x8x128xf32> -> vector<8x8x384xf32>
    %41 = vector.shape_cast %40 : vector<8x8x384xf32> to vector<64x384xf32>
    %c1_50 = arith.constant 1 : index
    %c0_51 = arith.constant 0 : index
    %c0_52 = arith.constant 0 : index
    %42 = vector.load %arg5[%c1_50, %c0_51, %c0_52] : memref<2x384x128xf32, #tpu.memory_space<vmem>>, vector<1x384x128xf32>
    %43 = vector.shape_cast %42 : vector<1x384x128xf32> to vector<384x128xf32>
    %cst_53 = arith.constant dense<0.000000e+00> : vector<64x128xf32>
    %44 = tpu.matmul %41, %43, %cst_53 {dimension_numbers = #tpu.dot_dimension_numbers<[1], [0], [0], [1], [0, 0, 1, 1], [], []>} : vector<64x384xf32>, vector<384x128xf32>, vector<64x128xf32> -> vector<64x128xf32>
    %45 = vector.shape_cast %44 : vector<64x128xf32> to vector<8x8x128xf32>
    %c1_54 = arith.constant 1 : index
    %c0_55 = arith.constant 0 : index
    %c0_56 = arith.constant 0 : index
    %46 = vector.load %arg6[%c1_54, %c0_55, %c0_56] : memref<2x1x128xf32, #tpu.memory_space<vmem>>, vector<1x1x128xf32>
    %47 = vector.shape_cast %46 : vector<1x1x128xf32> to vector<1x128xf32>
    %48 = vector.shape_cast %47 : vector<1x128xf32> to vector<1x1x128xf32>
    %49 = vector.broadcast %48 : vector<1x1x128xf32> to vector<8x8x128xf32>
    %50 = arith.addf %45, %49 : vector<8x8x128xf32>
    %cst_57 = arith.constant 0.000000e+00 : f32
    %51 = vector.broadcast %cst_57 : f32 to vector<8x8x128xf32>
    %52 = arith.maximumf %50, %51 : vector<8x8x128xf32>
    %53 = arith.addf %35, %52 : vector<8x8x128xf32>
    %cst_58 = arith.constant dense<0xFF800000> : vector<8x128xf32>
    %54 = vector.multi_reduction <maximumf>, %53, %cst_58 [1] : vector<8x8x128xf32> to vector<8x128xf32>
    %cst_59 = arith.constant dense<0.000000e+00> : vector<8x128xf32>
    %55 = vector.multi_reduction <add>, %53, %cst_59 [1] : vector<8x8x128xf32> to vector<8x128xf32>
    %c0_60 = arith.constant 0 : index
    %c0_61 = arith.constant 0 : index
    %56 = vector.load %arg2[%c0_60, %c0_61] : memref<8x1xf32, #tpu.memory_space<vmem>>, vector<8x1xf32>
    %57 = vector.broadcast %56 : vector<8x1xf32> to vector<8x128xf32>
    %58 = arith.mulf %55, %57 : vector<8x128xf32>
    %59 = tpu.concatenate %54, %58 in 1 : vector<8x128xf32>, vector<8x128xf32> -> vector<8x256xf32>
    %c0_62 = arith.constant 0 : index
    %c0_63 = arith.constant 0 : index
    %60 = vector.load %arg7[%c0_62, %c0_63] : memref<8x256xf32, #tpu.memory_space<vmem>>, vector<8x256xf32>
    tpu.vector_store %arg7[%c0_62, %c0_63], %59 {strides = array<i32>} : memref<8x256xf32, #tpu.memory_space<vmem>>, vector<8x256xf32>,
    return
  }
  func.func @transform_0(%arg0: i32) -> (i32, i32, i32) {
    %c0_i32 = arith.constant 0 : i32
    %c0_i32_0 = arith.constant 0 : i32
    %c0_i32_1 = arith.constant 0 : i32
    return %arg0, %c0_i32, %c0_i32_0 : i32, i32, i32
  }
  func.func @transform_1(%arg0: i32) -> (i32, i32) {
    %c0_i32 = arith.constant 0 : i32
    %c0_i32_0 = arith.constant 0 : i32
    return %arg0, %c0_i32 : i32, i32
  }
  func.func @transform_2(%arg0: i32) -> (i32, i32) {
    %c0_i32 = arith.constant 0 : i32
    %c0_i32_0 = arith.constant 0 : i32
    %c0_i32_1 = arith.constant 0 : i32
    return %c0_i32, %c0_i32_0 : i32, i32
  }
  func.func @transform_3(%arg0: i32) -> (i32, i32) {
    %c0_i32 = arith.constant 0 : i32
    %c0_i32_0 = arith.constant 0 : i32
    %c0_i32_1 = arith.constant 0 : i32
    return %c0_i32, %c0_i32_0 : i32, i32
  }
  func.func @transform_4(%arg0: i32) -> (i32, i32, i32) {
    %c0_i32 = arith.constant 0 : i32
    %c0_i32_0 = arith.constant 0 : i32
    %c0_i32_1 = arith.constant 0 : i32
    %c0_i32_2 = arith.constant 0 : i32
    return %c0_i32, %c0_i32_0, %c0_i32_1 : i32, i32, i32
  }
  func.func @transform_5(%arg0: i32) -> (i32, i32, i32) {
    %c0_i32 = arith.constant 0 : i32
    %c0_i32_0 = arith.constant 0 : i32
    %c0_i32_1 = arith.constant 0 : i32
    %c0_i32_2 = arith.constant 0 : i32
    return %c0_i32, %c0_i32_0, %c0_i32_1 : i32, i32, i32
  }
  func.func @transform_6(%arg0: i32) -> (i32, i32) {
    %c0_i32 = arith.constant 0 : i32
    %c0_i32_0 = arith.constant 0 : i32
    return %arg0, %c0_i32 : i32, i32
  }
}

</mosaic_0001>

<bundles_post_ra>
// kernel: tpu_custom_call.1
= control target key start
LH: loop header
LB: loop body
LE: loop exit
PB: predicated region body
PF: predicated region fallthrough
CT: control target
= control target key end

     0   :  { %11 = vsyncpa [#allocation4], 0  ;;  %s2173_s0 = inlined_call_operand.vmem [shape: f32[8,10,128], index: 0, kind: input, shape index: {}]   ;;  %s2174_s1 = inlined_call_operand.vmem [shape: f32[8,1], index: 1, kind: input, shape index: {}]   ;;  %s2175_s2 = inlined_call_operand.hbm [shape: f32[384,128], index: 2, kind: input, shape index: {}]   ;;  %s2176_s3 = inlined_call_operand.vmem [shape: f32[1,128], index: 3, kind: input, shape index: {}]   ;;  %s2177_s4 = inlined_call_operand.hbm [shape: f32[2,384,128], index: 4, kind: input, shape index: {}]   ;;  %s2178_s5 = inlined_call_operand.vmem [shape: f32[2,1,128], index: 5, kind: input, shape index: {}]   ;;  %s2179_s6 = inlined_call_operand.hbm [shape: f32[8,256], index: 6, kind: output, shape index: {}]  }
   0x1   :  { %12 = vsyncpa [#allocation7], 0 }
   0x2   :  { %13 = vsyncpa [#allocation5], 0  ;;  %s1853_s21 = smov [#allocation3]   ;;  %s1781_s25 = scalar_lea.hbm %s2175_s2, 6144 }
   0x3   :  { %s23_s22 = sshll.u32 %s1853_s21, 4  ;;  %p1782_p0 = scmp.ne.s32.totalorder %s2175_s2, %s1781_s25  ;;  %s24_s22 = int_to_ptr.vmem [resolvable:$true] %s23_s22 }
   0x4   :  { %p1785_p1 = scmp.lt.u32.totalorder %s1781_s25, %s2175_s2 }
   0x6   :  { %p1787_p2 = pnand %p1785_p1, %p1782_p0 }
   0x8   :  { %1790 = shalt.err (!%p1787_p2)
}
   0x9   :  { %s1791_s30 = scalar_lea.vmem %s24_s22, 6144  ;;  %p1796_p4 = scmp.lt.s32.totalorder %s24_s22, %s24_s22 }
   0xa   :  { %p1792_p3 = scmp.ne.s32.totalorder %s24_s22, %s1791_s30  ;;  %p1797_p5 = scmp.lt.s32.totalorder %s1791_s30, %s1791_s30 }
   0xc   :  { %p1798_p6 = por %p1797_p5, %p1796_p4 }
   0xe   :  { %p1799_p7 = pnand %p1798_p6, %p1792_p3 }
  0x10   :  { %1802 = shalt.err (!%p1799_p7)
}
  0x11   :  { %s1854_s7 = smov 128   ;;  %s1855_s8 = smov 8  }
  0x12   :  { %29 = dma.hbm_to_vmem [thread:$0]  %s2175_s2, 6144, %s24_s22, [#allocation4], %s1854_s7, %s1854_s7, %s1855_s8  }
  0x13   :  { %s1856_s11 = smov [#allocation6]   ;;  %s1803_s15 = scalar_lea.hbm %s2177_s4, 12288 }
  0x14   :  { %s37_s12 = sshll.u32 %s1856_s11, 4  ;;  %p1804_p8 = scmp.ne.s32.totalorder %s2177_s4, %s1803_s15  ;;  %s38_s12 = int_to_ptr.vmem [resolvable:$true] %s37_s12 }
  0x15   :  { %p1807_p9 = scmp.lt.u32.totalorder %s1803_s15, %s2177_s4 }
  0x17   :  { %p1809_p10 = pnand %p1807_p9, %p1804_p8 }
  0x19   :  { %1812 = shalt.err (!%p1809_p10)
}
  0x1a   :  { %s1813_s20 = scalar_lea.vmem %s38_s12, 12288  ;;  %p1818_p12 = scmp.lt.s32.totalorder %s38_s12, %s38_s12 }
  0x1b   :  { %p1814_p11 = scmp.ne.s32.totalorder %s38_s12, %s1813_s20  ;;  %p1819_p13 = scmp.lt.s32.totalorder %s1813_s20, %s1813_s20 }
  0x1d   :  { %p1820_p0 = por %p1819_p13, %p1818_p12 }
  0x1f   :  { %p1821_p1 = pnand %p1820_p0, %p1814_p11 }
  0x21   :  { %1824 = shalt.err (!%p1821_p1)
}
  0x22   :  { %43 = dma.hbm_to_vmem [thread:$0]  %s2177_s4, 12288, %s38_s12, [#allocation7], %s1854_s7, %s1854_s7, %s1855_s8  }
  0x23   :  { %1847 = dma.done.wait [#allocation4], 6144  }
  0x24   :  { %1848 = vsyncadd [#allocation4], 4294961152 }
  0x25   :  { %1849 = dma.done.wait [#allocation7], 12288  }
  0x26   :  { %1850 = vsyncadd [#allocation7], 4294955008  ;;  %v92_v0 = vld [vmem:[#allocation3 + $0x80] sm:$0xff]  ;;  %v93_v1 = vld [vmem:[#allocation3 + $0x88] sm:$0xff]  ;;  %vm1149_vm0 = vcmask 1041409   ;;  %vm1151_vm1 = vcmask 1042434  }
  0x27   :  { %v76_v2 = vld [vmem:[#allocation3] sm:$0xff]  ;;  %v1581_v3 = vpack.c.bf16 %v93_v1, %v92_v0  ;;  %v77_v4 = vld [vmem:[#allocation3 + $0x8] sm:$0xff]  ;;  %v94_v9 = vld [vmem:[#allocation3 + $0x90] sm:$0xff]  ;;  %vm1153_vm2 = vcmask 1043459   ;;  %vm1155_vm3 = vcmask 1044484   ;;  %vm1157_vm4 = vcmask 1045509  }
  0x28   :  { %v108_v5 = vld [vmem:[#allocation3 + $0x100] sm:$0xff]  ;;  %v109_v6 = vld [vmem:[#allocation3 + $0x108] sm:$0xff]  ;;  %v1583_v7 = vpack.c.bf16 %v77_v4, %v76_v2  ;;  %v95_v10 = vld [vmem:[#allocation3 + $0x98] sm:$0xff]  ;;  %vm1159_vm5 = vcmask 1046534   ;;  %vm1161_vm6 = vcmask 1047559  }
  0x29   :  { %v1613_v8 = vpack.c.bf16 %v109_v6, %v108_v5  ;;  %v78_v11 = vld [vmem:[#allocation3 + $0x10] sm:$0xff]  ;;  %1582 = vmatprep.subr.bf16.mxu0 %v1581_v3  ;;  %v1585_v12 = vpack.c.bf16 %v95_v10, %v94_v9  ;;  %v79_v13 = vld [vmem:[#allocation3 + $0x18] sm:$0xff]  ;;  %v96_v18 = vld [vmem:[#allocation3 + $0xa0] sm:$0xff] }
  0x2a   :  { %v110_v14 = vld [vmem:[#allocation3 + $0x110] sm:$0xff]  ;;  %v111_v15 = vld [vmem:[#allocation3 + $0x118] sm:$0xff]  ;;  %1584 = vmatpush3.bf16.msra.mxu0 %v1583_v7  ;;  %v1587_v16 = vpack.c.bf16 %v79_v13, %v78_v11  ;;  %v97_v19 = vld [vmem:[#allocation3 + $0xa8] sm:$0xff] }
  0x2b   :  { %1614 = vmatprep.subr.bf16.mxu1 %v1613_v8  ;;  %v1617_v17 = vpack.c.bf16 %v111_v15, %v110_v14  ;;  %v80_v20 = vld [vmem:[#allocation3 + $0x20] sm:$0xff]  ;;  %1586 = vmatprep.subr.bf16.mxu0 %v1585_v12  ;;  %v1589_v21 = vpack.c.bf16 %v97_v19, %v96_v18  ;;  %v81_v22 = vld [vmem:[#allocation3 + $0x28] sm:$0xff]  ;;  %v98_v26 = vld [vmem:[#allocation3 + $0xb0] sm:$0xff] }
  0x2c   :  { %1616 = vmatpush3.bf16.msra.mxu1 %v1613_v8  ;;  %v112_v23 = vld [vmem:[#allocation3 + $0x120] sm:$0xff]  ;;  %v113_v24 = vld [vmem:[#allocation3 + $0x128] sm:$0xff]  ;;  %v99_v27 = vld [vmem:[#allocation3 + $0xb8] sm:$0xff]  ;;  %v1591_v30 = vpack.c.bf16 %v81_v22, %v80_v20 }
  0x2d   :  { %1618 = vmatprep.subr.bf16.mxu1 %v1617_v17  ;;  %v1621_v25 = vpack.c.bf16 %v113_v24, %v112_v23  ;;  %v114_v28 = vld [vmem:[#allocation3 + $0x130] sm:$0xff]  ;;  %v115_v29 = vld [vmem:[#allocation3 + $0x138] sm:$0xff]  ;;  %v1593_v31 = vpack.c.bf16 %v99_v27, %v98_v26  ;;  %v100_v35 = vld [vmem:[#allocation3 + $0xc0] sm:$0xff] }
  0x2e   :  { %1588 = vmatpush3.bf16.msra.mxu0 %v1587_v16  ;;  %v82_v32 = vld [vmem:[#allocation3 + $0x30] sm:$0xff]  ;;  %v83_v33 = vld [vmem:[#allocation3 + $0x38] sm:$0xff]  ;;  %v1625_v34 = vpack.c.bf16 %v115_v29, %v114_v28  ;;  %v101_v36 = vld [vmem:[#allocation3 + $0xc8] sm:$0xff] }
  0x2f   :  { %1590 = vmatprep.subr.bf16.mxu0 %v1589_v21  ;;  %v116_v37 = vld [vmem:[#allocation3 + $0x140] sm:$0xff]  ;;  %v117_v38 = vld [vmem:[#allocation3 + $0x148] sm:$0xff]  ;;  %v1595_v39 = vpack.c.bf16 %v83_v33, %v82_v32  ;;  %v1597_v40 = vpack.c.bf16 %v101_v36, %v100_v35  ;;  %v102_v44 = vld [vmem:[#allocation3 + $0xd0] sm:$0xff] }
  0x30   :  { %1620 = vmatpush3.bf16.msra.mxu1 %v1617_v17  ;;  %v84_v41 = vld [vmem:[#allocation3 + $0x40] sm:$0xff]  ;;  %v85_v42 = vld [vmem:[#allocation3 + $0x48] sm:$0xff]  ;;  %v1629_v43 = vpack.c.bf16 %v117_v38, %v116_v37  ;;  %v103_v45 = vld [vmem:[#allocation3 + $0xd8] sm:$0xff] }
  0x31   :  { %1622 = vmatprep.subr.bf16.mxu1 %v1621_v25  ;;  %v118_v46 = vld [vmem:[#allocation3 + $0x150] sm:$0xff]  ;;  %v119_v47 = vld [vmem:[#allocation3 + $0x158] sm:$0xff]  ;;  %v1599_v48 = vpack.c.bf16 %v85_v42, %v84_v41  ;;  %v60_v49 = vld [vmem:[%s2173_s0 + $0x1] sm:$0xff]  ;;  %v1601_v51 = vpack.c.bf16 %v103_v45, %v102_v44 }
  0x32   :  { %1592 = vmatpush3.bf16.msra.mxu0 %v1591_v30  ;;  %v68_v50 = vld [vmem:[%s2173_s0 + $0x2] sm:$0xff]  ;;  %v86_v52 = vld [vmem:[#allocation3 + $0x50] sm:$0xff]  ;;  %v87_v53 = vld [vmem:[#allocation3 + $0x58] sm:$0xff]  ;;  %v1633_v54 = vpack.c.bf16 %v119_v47, %v118_v46  ;;  %188 = vmatprep.mubr.f32.mxu0 %v60_v49 }
  0x33   :  { %1594 = vmatprep.subr.bf16.mxu0 %v1593_v31  ;;  %v104_v55 = vld [vmem:[#allocation3 + $0xe0] sm:$0xff]  ;;  %v105_v56 = vld [vmem:[#allocation3 + $0xe8] sm:$0xff]  ;;  %1481 = vmatprep.mubr.f32.mxu1 %v68_v50  ;;  %v1603_v59 = vpack.c.bf16 %v87_v53, %v86_v52  ;;  %v106_v0 = vld [vmem:[#allocation3 + $0xf0] sm:$0xff] }
  0x34   :  { %1624 = vmatpush3.bf16.msra.mxu1 %v1621_v25  ;;  %v120_v57 = vld [vmem:[#allocation3 + $0x160] sm:$0xff]  ;;  %v121_v58 = vld [vmem:[#allocation3 + $0x168] sm:$0xff]  ;;  %v1605_v60 = vpack.c.bf16 %v105_v56, %v104_v55  ;;  %v107_v1 = vld [vmem:[#allocation3 + $0xf8] sm:$0xff] }
  0x35   :  { %1626 = vmatprep.subr.bf16.mxu1 %v1625_v34  ;;  %v88_v61 = vld [vmem:[#allocation3 + $0x60] sm:$0xff]  ;;  %v89_v62 = vld [vmem:[#allocation3 + $0x68] sm:$0xff]  ;;  %v1637_v63 = vpack.c.bf16 %v121_v58, %v120_v57  ;;  %v122_v2 = vld [vmem:[#allocation3 + $0x170] sm:$0xff]  ;;  %v1609_v5 = vpack.c.bf16 %v107_v1, %v106_v0 }
  0x36   :  { %1596 = vmatpush3.bf16.msra.mxu0 %v1595_v39  ;;  %v123_v3 = vld [vmem:[#allocation3 + $0x178] sm:$0xff]  ;;  %v1607_v4 = vpack.c.bf16 %v89_v62, %v88_v61  ;;  %v90_v6 = vld [vmem:[#allocation3 + $0x70] sm:$0xff]  ;;  %v421_v9 = vld [vmem:[#allocation6 + $0x80] sm:$0xff] }
  0x37   :  { %1598 = vmatprep.subr.bf16.mxu0 %v1597_v40  ;;  %v91_v7 = vld [vmem:[#allocation3 + $0x78] sm:$0xff]  ;;  %v1641_v8 = vpack.c.bf16 %v123_v3, %v122_v2  ;;  %v422_v10 = vld [vmem:[#allocation6 + $0x88] sm:$0xff]  ;;  %v437_v11 = vld [vmem:[#allocation6 + $0x100] sm:$0xff] }
  0x38   :  { %1628 = vmatpush3.bf16.msra.mxu1 %v1625_v34  ;;  %v438_v12 = vld [vmem:[#allocation6 + $0x108] sm:$0xff]  ;;  %v1611_v13 = vpack.c.bf16 %v91_v7, %v90_v6  ;;  %v1645_v14 = vpack.c.bf16 %v422_v10, %v421_v9  ;;  %v405_v15 = vld [vmem:[#allocation6] sm:$0xff]  ;;  %v423_v18 = vld [vmem:[#allocation6 + $0x90] sm:$0xff] }
  0x39   :  { %1630 = vmatprep.subr.bf16.mxu1 %v1629_v43  ;;  %v406_v16 = vld [vmem:[#allocation6 + $0x8] sm:$0xff]  ;;  %v1677_v17 = vpack.c.bf16 %v438_v12, %v437_v11  ;;  %v424_v19 = vld [vmem:[#allocation6 + $0x98] sm:$0xff]  ;;  %v52_v20 = vld [vmem:[%s2173_s0] sm:$0xff] }
  0x3a   :  { %1600 = vmatpush3.bf16.msra.mxu0 %v1599_v48  ;;  %v439_v21 = vld [vmem:[#allocation6 + $0x110] sm:$0xff]  ;;  %v440_v22 = vld [vmem:[#allocation6 + $0x118] sm:$0xff]  ;;  %v1647_v25 = vpack.c.bf16 %v406_v16, %v405_v15  ;;  %v70_v26 = vld [vmem:[%s2173_s0 + $0x22] sm:$0xff]  ;;  %v1649_v27 = vpack.c.bf16 %v424_v19, %v423_v18 }
  0x3b   :  { %1602 = vmatprep.subr.bf16.mxu0 %v1601_v51  ;;  %v69_v23 = vld [vmem:[%s2173_s0 + $0x12] sm:$0xff]  ;;  %v1681_v30 = vpack.c.bf16 %v440_v22, %v439_v21  ;;  %v425_v31 = vld [vmem:[#allocation6 + $0xa0] sm:$0xff]  ;;  %v426_v32 = vld [vmem:[#allocation6 + $0xa8] sm:$0xff] }
  0x3c   :  { %1632 = vmatpush3.bf16.msra.mxu1 %v1629_v43  ;;  %v61_v24 = vld [vmem:[%s2173_s0 + $0x11] sm:$0xff]  ;;  %v441_v34 = vld [vmem:[#allocation6 + $0x120] sm:$0xff]  ;;  %v442_v35 = vld [vmem:[#allocation6 + $0x128] sm:$0xff]  ;;  %v1653_v40 = vpack.c.bf16 %v426_v32, %v425_v31 }
  0x3d   :  { %1634 = vmatprep.subr.bf16.mxu1 %v1633_v54  ;;  %v407_v28 = vld [vmem:[#allocation6 + $0x10] sm:$0xff]  ;;  %v408_v29 = vld [vmem:[#allocation6 + $0x18] sm:$0xff]  ;;  %v62_v36 = vld [vmem:[%s2173_s0 + $0x21] sm:$0xff]  ;;  %v1685_v43 = vpack.c.bf16 %v442_v35, %v441_v34 }
  0x3e   :  { %1604 = vmatpush3.bf16.msra.mxu0 %v1603_v59  ;;  %v53_v33 = vld [vmem:[%s2173_s0 + $0x10] sm:$0xff]  ;;  %v1651_v38 = vpack.c.bf16 %v408_v29, %v407_v28  ;;  %v72_v39 = vld [vmem:[%s2173_s0 + $0x42] sm:$0xff]  ;;  %v428_v45 = vld [vmem:[#allocation6 + $0xb8] sm:$0xff]  ;;  %v1857_v28 = vmov 0.0  }
  0x3f   :  { %1606 = vmatprep.subr.bf16.mxu0 %v1605_v60  ;;  %v71_v37 = vld [vmem:[%s2173_s0 + $0x32] sm:$0xff]  ;;  %v409_v41 = vld [vmem:[#allocation6 + $0x20] sm:$0xff]  ;;  %v410_v42 = vld [vmem:[#allocation6 + $0x28] sm:$0xff]  ;;  %365 = vst [vmem:[#allocation2 + $0x9] sm:$0x1] %v1857_v28 }
  0x40   :  { %1636 = vmatpush3.bf16.msra.mxu1 %v1633_v54  ;;  %v427_v44 = vld [vmem:[#allocation6 + $0xb0] sm:$0xff]  ;;  %v54_v46 = vld [vmem:[%s2173_s0 + $0x20] sm:$0xff]  ;;  %v1655_v49 = vpack.c.bf16 %v410_v42, %v409_v41  ;;  %v444_v2 = vld [vmem:[#allocation6 + $0x138] sm:$0xff]  ;;  %357 = vst [vmem:[#allocation2] sm:$0x1] %v1857_v28 }
  0x41   :  { %1638 = vmatprep.subr.bf16.mxu1 %v1637_v63  ;;  %v63_v47 = vld [vmem:[%s2173_s0 + $0x31] sm:$0xff]  ;;  %v74_v50 = vld [vmem:[%s2173_s0 + $0x62] sm:$0xff]  ;;  %v1657_v51 = vpack.c.bf16 %v428_v45, %v427_v44  ;;  %358 = vst [vmem:[#allocation2 + $0x10] sm:$0x1] %v1857_v28  ;;  %359 = vst [vmem:[#allocation2 + $0x20] sm:$0x1] %v1857_v28 }
  0x42   :  { %1608 = vmatpush3.bf16.msra.mxu0 %v1607_v4  ;;  %v73_v48 = vld [vmem:[%s2173_s0 + $0x52] sm:$0xff]  ;;  %v64_v53 = vld [vmem:[%s2173_s0 + $0x41] sm:$0xff]  ;;  %360 = vst [vmem:[#allocation2 + $0x30] sm:$0x1] %v1857_v28  ;;  %361 = vst [vmem:[#allocation2 + $0x40] sm:$0x1] %v1857_v28 }
  0x43   :  { %1610 = vmatprep.subr.bf16.mxu0 %v1609_v5  ;;  %v55_v52 = vld [vmem:[%s2173_s0 + $0x30] sm:$0xff]  ;;  %v56_v55 = vld [vmem:[%s2173_s0 + $0x40] sm:$0xff]  ;;  %v430_v5 = vld [vmem:[#allocation6 + $0xc8] sm:$0xff]  ;;  %362 = vst [vmem:[#allocation2 + $0x50] sm:$0x1] %v1857_v28 }
  0x44   :  { %1640 = vmatpush3.bf16.msra.mxu1 %v1637_v63  ;;  %v75_v54 = vld [vmem:[%s2173_s0 + $0x72] sm:$0xff]  ;;  %v66_v58 = vld [vmem:[%s2173_s0 + $0x61] sm:$0xff]  ;;  %363 = vst [vmem:[#allocation2 + $0x60] sm:$0x1] %v1857_v28  ;;  %364 = vst [vmem:[#allocation2 + $0x70] sm:$0x1] %v1857_v28 }
  0x45   :  { %1642 = vmatprep.subr.bf16.mxu1 %v1641_v8  ;;  %v65_v56 = vld [vmem:[%s2173_s0 + $0x51] sm:$0xff]  ;;  %v58_v59 = vld [vmem:[%s2173_s0 + $0x60] sm:$0xff]  ;;  %v414_v7 = vld [vmem:[#allocation6 + $0x48] sm:$0xff]  ;;  %366 = vst [vmem:[#allocation2 + $0x19] sm:$0x1] %v1857_v28 }
  0x46   :  { %1612 = vmatpush3.bf16.msra.mxu0 %v1611_v13  ;;  %v57_v57 = vld [vmem:[%s2173_s0 + $0x50] sm:$0xff]  ;;  %v412_v63 = vld [vmem:[#allocation6 + $0x38] sm:$0xff]  ;;  %v429_v3 = vld [vmem:[#allocation6 + $0xc0] sm:$0xff]  ;;  %367 = vst [vmem:[#allocation2 + $0x29] sm:$0x1] %v1857_v28 }
  0x47   :  { %1646 = vmatprep.subr.bf16.mxu0 %v1645_v14  ;;  %v67_v60 = vld [vmem:[%s2173_s0 + $0x71] sm:$0xff]  ;;  %v413_v6 = vld [vmem:[#allocation6 + $0x40] sm:$0xff]  ;;  %v446_v11 = vld [vmem:[#allocation6 + $0x148] sm:$0xff]  ;;  %368 = vst [vmem:[#allocation2 + $0x39] sm:$0x1] %v1857_v28 }
  0x48   :  { %1644 = vmatpush3.bf16.msra.mxu1 %v1641_v8  ;;  %v59_v61 = vld [vmem:[%s2173_s0 + $0x70] sm:$0xff]  ;;  %v1661_v8 = vpack.c.bf16 %v430_v5, %v429_v3  ;;  %v1663_v9 = vpack.c.bf16 %v414_v7, %v413_v6  ;;  %v445_v10 = vld [vmem:[#allocation6 + $0x140] sm:$0xff]  ;;  %v432_v14 = vld [vmem:[#allocation6 + $0xd8] sm:$0xff]  ;;  %369 = vst [vmem:[#allocation2 + $0x49] sm:$0x1] %v1857_v28 }
  0x49   :  { %1678 = vmatprep.subr.bf16.mxu1 %v1677_v17  ;;  %189 = vmatmul.mubr.f32.vlgmr.msra.gmra.mrb[0].mxu0 %v52_v20  ;;  %v411_v62 = vld [vmem:[#allocation6 + $0x30] sm:$0xff]  ;;  %v1693_v13 = vpack.c.bf16 %v446_v11, %v445_v10  ;;  %v448_v20 = vld [vmem:[#allocation6 + $0x158] sm:$0xff]  ;;  %v433_v21 = vld [vmem:[#allocation6 + $0xe0] sm:$0xff]  ;;  %370 = vst [vmem:[#allocation2 + $0x59] sm:$0x1] %v1857_v28 }
  0x4a   :  { %193 = vmatprep.mubr.f32.mxu0 %v61_v24  ;;  %1648 = vmatpush3.bf16.msra.mxu0 %v1647_v25  ;;  %v1659_v0 = vpack.c.bf16 %v412_v63, %v411_v62  ;;  %v443_v1 = vld [vmem:[#allocation6 + $0x130] sm:$0xff]  ;;  %v417_v24 = vld [vmem:[#allocation6 + $0x60] sm:$0xff]  ;;  %v418_v25 = vld [vmem:[#allocation6 + $0x68] sm:$0xff]  ;;  %371 = vst [vmem:[#allocation2 + $0x69] sm:$0x1] %v1857_v28 }
  0x4b   :  { %1482 = vmatmul.mubr.f32.vlgmr.msra.gmra.mrb[0].mxu1 %v69_v23  ;;  %1650 = vmatprep.subr.bf16.mxu0 %v1649_v27  ;;  %v1689_v4 = vpack.c.bf16 %v444_v2, %v443_v1  ;;  %v431_v12 = vld [vmem:[#allocation6 + $0xd0] sm:$0xff]  ;;  %v434_v23 = vld [vmem:[#allocation6 + $0xe8] sm:$0xff]  ;;  %v1671_v27 = vpack.c.bf16 %v418_v25, %v417_v24  ;;  %372 = vst [vmem:[#allocation2 + $0x79] sm:$0x1] %v1857_v28  ;;  %v449_v29 = vld [vmem:[#allocation6 + $0x160] sm:$0xff] }
  0x4c   :  { %1484 = vmatprep.mubr.f32.mxu1 %v70_v26  ;;  %1680 = vmatpush3.bf16.msra.mxu1 %v1677_v17  ;;  %v415_v15 = vld [vmem:[#allocation6 + $0x50] sm:$0xff]  ;;  %v1665_v16 = vpack.c.bf16 %v432_v14, %v431_v12  ;;  %v416_v17 = vld [vmem:[#allocation6 + $0x58] sm:$0xff]  ;;  %v1669_v26 = vpack.c.bf16 %v434_v23, %v433_v21  ;;  %v743_v41 = vld [vmem:[#allocation6 + $0x200] sm:$0xff] }
  0x4d   :  { %194 = vmatmul.mubr.f32.gmra.mrb[2].mxu0 %v53_v33  ;;  %1682 = vmatprep.subr.bf16.mxu1 %v1681_v30  ;;  %v1667_v18 = vpack.c.bf16 %v416_v17, %v415_v15  ;;  %v447_v19 = vld [vmem:[#allocation6 + $0x150] sm:$0xff]  ;;  %v436_v33 = vld [vmem:[#allocation6 + $0xf8] sm:$0xff]  ;;  %v744_v42 = vld [vmem:[#allocation6 + $0x208] sm:$0xff] }
  0x4e   :  { %198 = vmatprep.mubr.f32.mxu0 %v62_v36  ;;  %1652 = vmatpush3.bf16.msra.mxu0 %v1651_v38  ;;  %v1697_v22 = vpack.c.bf16 %v448_v20, %v447_v19  ;;  %v435_v31 = vld [vmem:[#allocation6 + $0xf0] sm:$0xff]  ;;  %v420_v35 = vld [vmem:[#allocation6 + $0x78] sm:$0xff]  ;;  %v759_v44 = vld [vmem:[#allocation6 + $0x280] sm:$0xff] }
  0x4f   :  { %1485 = vmatmul.mubr.f32.gmra.mrb[2].mxu1 %v71_v37  ;;  %1654 = vmatprep.subr.bf16.mxu0 %v1653_v40  ;;  %v419_v34 = vld [vmem:[#allocation6 + $0x70] sm:$0xff]  ;;  %v1673_v36 = vpack.c.bf16 %v436_v33, %v435_v31  ;;  %v760_v45 = vld [vmem:[#allocation6 + $0x288] sm:$0xff]  ;;  %v727_v7 = vld [vmem:[#allocation6 + $0x180] sm:$0xff] }
  0x50   :  { %1487 = vmatprep.mubr.f32.mxu1 %v72_v39  ;;  %1684 = vmatpush3.bf16.msra.mxu1 %v1681_v30  ;;  %v450_v30 = vld [vmem:[#allocation6 + $0x168] sm:$0xff]  ;;  %v1675_v37 = vpack.c.bf16 %v420_v35, %v419_v34  ;;  %v451_v38 = vld [vmem:[#allocation6 + $0x170] sm:$0xff]  ;;  %v452_v39 = vld [vmem:[#allocation6 + $0x178] sm:$0xff] }
  0x51   :  { %199 = vmatmul.mubr.f32.gmra.mrb[4].mxu0 %v54_v46  ;;  %1686 = vmatprep.subr.bf16.mxu1 %v1685_v43  ;;  %v1701_v32 = vpack.c.bf16 %v450_v30, %v449_v29  ;;  %v1705_v40 = vpack.c.bf16 %v452_v39, %v451_v38  ;;  %v1991_v46 = vpack.c.bf16 %v760_v45, %v759_v44  ;;  %v745_v11 = vld [vmem:[#allocation6 + $0x210] sm:$0xff]  ;;  %v746_v12 = vld [vmem:[#allocation6 + $0x218] sm:$0xff]  ;;  %v747_v30 = vld [vmem:[#allocation6 + $0x220] sm:$0xff] }
  0x52   :  { %203 = vmatprep.mubr.f32.mxu0 %v63_v47  ;;  %1656 = vmatpush3.bf16.msra.mxu0 %v1655_v49  ;;  %v1713_v20 = vpack.c.bf16 %v746_v12, %v745_v11  ;;  %v729_v21 = vld [vmem:[#allocation6 + $0x190] sm:$0xff]  ;;  %v748_v31 = vld [vmem:[#allocation6 + $0x228] sm:$0xff]  ;;  %v763_v12 = vld [vmem:[#allocation6 + $0x2a0] sm:$0xff] }
  0x53   :  { %1488 = vmatmul.mubr.f32.gmra.mrb[4].mxu1 %v73_v48  ;;  %1658 = vmatprep.subr.bf16.mxu0 %v1657_v51  ;;  %v761_v23 = vld [vmem:[#allocation6 + $0x290] sm:$0xff] }
  0x54   :  { %1490 = vmatprep.mubr.f32.mxu1 %v74_v50  ;;  %1688 = vmatpush3.bf16.msra.mxu1 %v1685_v43  ;;  %v1709_v43 = vpack.c.bf16 %v744_v42, %v743_v41  ;;  %v1717_v41 = vpack.c.bf16 %v748_v31, %v747_v30  ;;  %v732_v42 = vld [vmem:[#allocation6 + $0x1a8] sm:$0xff]  ;;  %v767_v31 = vld [vmem:[#allocation6 + $0x2c0] sm:$0xff] }
  0x55   :  { %204 = vmatmul.mubr.f32.gmra.mrb[6].mxu0 %v55_v52  ;;  %1690 = vmatprep.subr.bf16.mxu1 %v1689_v4  ;;  %v1997_v52 = vld [vmem:[%s2176_s3] ss:$0 sm:$0xff] }
  0x56   :  { %208 = vmatprep.mubr.f32.mxu0 %v64_v53  ;;  %1660 = vmatpush3.bf16.msra.mxu0 %v1659_v0 }
  0x57   :  { %1491 = vmatmul.mubr.f32.gmra.mrb[6].mxu1 %v75_v54  ;;  %1662 = vmatprep.subr.bf16.mxu0 %v1661_v8  ;;  %v728_v8 = vld [vmem:[#allocation6 + $0x188] sm:$0xff] }
  0x58   :  { %1692 = vmatpush3.bf16.msra.mxu1 %v1689_v4 }
  0x59   :  { %209 = vmatmul.mubr.f32.gmra.mrb[8].mxu0 %v56_v55  ;;  %1694 = vmatprep.subr.bf16.mxu1 %v1693_v13 }
  0x5a   :  { %213 = vmatprep.mubr.f32.mxu0 %v65_v56  ;;  %1664 = vmatpush3.bf16.msra.mxu0 %v1663_v9 }
  0x5b   :  { %1666 = vmatprep.subr.bf16.mxu0 %v1665_v16  ;;  %v1711_v16 = vpack.c.bf16 %v728_v8, %v727_v7 }
  0x5c   :  { %1696 = vmatpush3.bf16.msra.mxu1 %v1693_v13 }
  0x5d   :  { %214 = vmatmul.mubr.f32.gmra.mrb[10].mxu0 %v57_v57  ;;  %1698 = vmatprep.subr.bf16.mxu1 %v1697_v22 }
  0x5e   :  { %218 = vmatprep.mubr.f32.mxu0 %v66_v58  ;;  %1668 = vmatpush3.bf16.msra.mxu0 %v1667_v18 }
  0x5f   :  { %1670 = vmatprep.subr.bf16.mxu0 %v1669_v26 }
  0x60   :  { %1700 = vmatpush3.bf16.msra.mxu1 %v1697_v22  ;;  %v730_v22 = vld [vmem:[#allocation6 + $0x198] sm:$0xff] }
  0x61   :  { %219 = vmatmul.mubr.f32.gmra.mrb[12].mxu0 %v58_v59  ;;  %1702 = vmatprep.subr.bf16.mxu1 %v1701_v32  ;;  %v1715_v35 = vpack.c.bf16 %v730_v22, %v729_v21  ;;  %v765_v22 = vld [vmem:[#allocation6 + $0x2b0] sm:$0xff] }
  0x62   :  { %223 = vmatprep.mubr.f32.mxu0 %v67_v60  ;;  %1672 = vmatpush3.bf16.msra.mxu0 %v1671_v27  ;;  %v762_v27 = vld [vmem:[#allocation6 + $0x298] sm:$0xff] }
  0x63   :  { %1674 = vmatprep.subr.bf16.mxu0 %v1673_v36  ;;  %v1745_v36 = vpack.c.bf16 %v762_v27, %v761_v23  ;;  %v766_v23 = vld [vmem:[#allocation6 + $0x2b8] sm:$0xff] }
  0x64   :  { %1704 = vmatpush3.bf16.msra.mxu1 %v1701_v32 }
  0x65   :  { %224 = vmatmul.mubr.f32.gmra.mrb[14].mxu0 %v59_v61  ;;  %1706 = vmatprep.subr.bf16.mxu1 %v1705_v40 }
  0x66   :  { %1676 = vmatpush3.bf16.msra.mxu0 %v1675_v37  ;;  %v731_v37 = vld [vmem:[#allocation6 + $0x1a0] sm:$0xff] }
  0x67   :  { %1710 = vmatprep.subr.bf16.mxu0 %v1709_v43 }
  0x68   :  { %1708 = vmatpush3.bf16.msra.mxu1 %v1705_v40 }
  0x69   :  { %1742 = vmatprep.subr.bf16.mxu1 %v1991_v46 }
 0x11c   :  { %v1241_v47 = vpop.f32.mrb[0].mxu0 }
 0x11d   :  { %v1242_v48 = vpop.f32.mrb[1].mxu0 }
 0x11e   :  { %v1483_v49 = vpop.f32.mrb[0].mxu1  ;;  %v1243_v50 = vadd.f32 %v1242_v48, %v1241_v47 }
 0x11f   :  { %v295_v51 = vpop.f32.mrb[1].mxu1 }
 0x120   :  { %v296_v53 = vadd.f32 %v1243_v50, %v295_v51  ;;  %v1244_v54 = vpop.f32.mrb[2].mxu0 }
 0x121   :  { %v1245_v55 = vpop.f32.mrb[3].mxu0 }
 0x122   :  { %v1486_v56 = vpop.f32.mrb[2].mxu1  ;;  %v341_v57 = vadd.f32 %v1997_v52, %v296_v53  ;;  %v1246_v58 = vadd.f32 %v1245_v55, %v1244_v54 }
 0x123   :  { %v305_v59 = vpop.f32.mrb[3].mxu1 }
 0x124   :  { %v2000_v60 = vmax.f32 %v341_v57, 0.0  ;;  %v301_v61 = vadd.f32 %v1483_v49, %v1246_v58  ;;  %v1247_v62 = vpop.f32.mrb[4].mxu0  ;;  %v1719_v49 = vpack.c.bf16 %v732_v42, %v731_v37  ;;  %v770_v42 = vld [vmem:[#allocation6 + $0x2d8] sm:$0xff] }
 0x125   :  { %v1248_v63 = vpop.f32.mrb[5].mxu0 }
 0x126   :  { %v1489_v0 = vpop.f32.mrb[4].mxu1  ;;  %373 = vst [vmem:[#allocation2 + $0x1] sm:$0xff] %v2000_v60  ;;  %v342_v1 = vadd.f32 %v1997_v52, %v301_v61  ;;  %v1249_v2 = vadd.f32 %v1248_v63, %v1247_v62  ;;  %517 = vmatprep.mubr.f32.mxu0 %v2000_v60 }
 0x127   :  { %v315_v3 = vpop.f32.mrb[5].mxu1 }
 0x128   :  { %v2005_v4 = vmax.f32 %v342_v1, 0.0  ;;  %v306_v5 = vadd.f32 %v1249_v2, %v305_v59  ;;  %v1250_v6 = vpop.f32.mrb[6].mxu0 }
 0x129   :  { %v1251_v9 = vpop.f32.mrb[7].mxu0 }
 0x12a   :  { %v2007_v10 = vpop.f32.mrb[6].mxu1  ;;  %374 = vst [vmem:[#allocation2 + $0x11] sm:$0xff] %v2005_v4  ;;  %v343_v13 = vadd.f32 %v1997_v52, %v306_v5  ;;  %v1252_v14 = vadd.f32 %v1251_v9, %v1250_v6 }
 0x12b   :  { %v325_v15 = vpop.f32.mrb[7].mxu1 }
 0x12c   :  { %v2011_v17 = vmax.f32 %v343_v13, 0.0  ;;  %v311_v18 = vadd.f32 %v1486_v56, %v1252_v14  ;;  %v1253_v19 = vpop.f32.mrb[8].mxu0  ;;  %v764_v13 = vld [vmem:[#allocation6 + $0x2a8] sm:$0xff] }
 0x12d   :  { %v1254_v24 = vpop.f32.mrb[9].mxu0  ;;  %v397_v25 = vld [vmem:[#allocation2 + $0x2] sm:$0xff]  ;;  %v1749_v14 = vpack.c.bf16 %v764_v13, %v763_v12  ;;  %v2049_v12 = vld [vmem:[%s2178_s5] ss:$0 sm:$0xff] }
 0x12e   :  { %v381_v26 = vld [vmem:[#allocation2] sm:$0xff]  ;;  %375 = vst [vmem:[#allocation2 + $0x21] sm:$0xff] %v2011_v17  ;;  %v344_v28 = vadd.f32 %v1997_v52, %v311_v18  ;;  %v1255_v29 = vadd.f32 %v1254_v24, %v1253_v19  ;;  %1525 = vmatprep.mubr.f32.mxu1 %v397_v25  ;;  %v733_v19 = vld [vmem:[#allocation6 + $0x1b0] sm:$0xff]  ;;  %v1753_v24 = vpack.c.bf16 %v766_v23, %v765_v22 }
 0x12f   :  { %518 = vmatmul.mubr.f32.vlgmr.msra.gmra.mrb[16].mxu0 %v381_v26  ;;  %v751_v25 = vld [vmem:[#allocation6 + $0x240] sm:$0xff]  ;;  %v752_v26 = vld [vmem:[#allocation6 + $0x248] sm:$0xff] }
 0x130   :  { %522 = vmatprep.mubr.f32.mxu0 %v2005_v4  ;;  %1712 = vmatpush3.bf16.msra.mxu0 %v1711_v16  ;;  %v2016_v32 = vmax.f32 %v344_v28, 0.0  ;;  %v316_v33 = vadd.f32 %v1255_v29, %v315_v3  ;;  %v1256_v34 = vpop.f32.mrb[10].mxu0  ;;  %v750_v16 = vld [vmem:[#allocation6 + $0x238] sm:$0xff]  ;;  %v1725_v27 = vpack.c.bf16 %v752_v26, %v751_v25  ;;  %v735_v28 = vld [vmem:[#allocation6 + $0x1c0] sm:$0xff]  ;;  %v736_v29 = vld [vmem:[#allocation6 + $0x1c8] sm:$0xff] }
 0x131   :  { %1714 = vmatprep.subr.bf16.mxu0 %v1713_v20  ;;  %v1257_v38 = vpop.f32.mrb[11].mxu0  ;;  %v398_v39 = vld [vmem:[#allocation2 + $0x12] sm:$0xff]  ;;  %v1727_v30 = vpack.c.bf16 %v736_v29, %v735_v28 }
 0x132   :  { %v382_v40 = vld [vmem:[#allocation2 + $0x10] sm:$0xff]  ;;  %376 = vst [vmem:[#allocation2 + $0x31] sm:$0xff] %v2016_v32  ;;  %v345_v43 = vadd.f32 %v1997_v52, %v316_v33  ;;  %v1258_v44 = vadd.f32 %v1257_v38, %v1256_v34  ;;  %1526 = vmatmul.mubr.f32.vlgmr.msra.gmra.mrb[8].mxu1 %v398_v39  ;;  %v734_v20 = vld [vmem:[#allocation6 + $0x1b8] sm:$0xff]  ;;  %v768_v33 = vld [vmem:[#allocation6 + $0x2c8] sm:$0xff] }
 0x133   :  { %523 = vmatmul.mubr.f32.gmra.mrb[18].mxu0 %v382_v40  ;;  %1744 = vmatpush3.bf16.msra.mxu1 %v1991_v46  ;;  %v1723_v21 = vpack.c.bf16 %v734_v20, %v733_v19  ;;  %v1757_v34 = vpack.c.bf16 %v768_v33, %v767_v31  ;;  %v737_v38 = vld [vmem:[#allocation6 + $0x1d0] sm:$0xff]  ;;  %v738_v39 = vld [vmem:[#allocation6 + $0x1d8] sm:$0xff] }
 0x134   :  { %527 = vmatprep.mubr.f32.mxu0 %v2011_v17  ;;  %v2022_v45 = vmax.f32 %v345_v43, 0.0  ;;  %v321_v47 = vadd.f32 %v1489_v0, %v1258_v44  ;;  %v1259_v48 = vpop.f32.mrb[12].mxu0  ;;  %1716 = vmatpush3.bf16.msra.mxu0 %v1715_v35  ;;  %v753_v35 = vld [vmem:[#allocation6 + $0x250] sm:$0xff]  ;;  %v1731_v40 = vpack.c.bf16 %v738_v39, %v737_v38  ;;  %v755_v44 = vld [vmem:[#allocation6 + $0x260] sm:$0xff] }
 0x135   :  { %1746 = vmatprep.subr.bf16.mxu1 %v1745_v36  ;;  %v1260_v50 = vpop.f32.mrb[13].mxu0  ;;  %v399_v51 = vld [vmem:[#allocation2 + $0x22] sm:$0xff]  ;;  %1718 = vmatprep.subr.bf16.mxu0 %v1717_v41  ;;  %v769_v41 = vld [vmem:[#allocation6 + $0x2d0] sm:$0xff] }
 0x136   :  { %v383_v53 = vld [vmem:[#allocation2 + $0x20] sm:$0xff]  ;;  %377 = vst [vmem:[#allocation2 + $0x41] sm:$0xff] %v2022_v45  ;;  %v346_v54 = vadd.f32 %v1997_v52, %v321_v47  ;;  %v1261_v55 = vadd.f32 %v1260_v50, %v1259_v48  ;;  %1528 = vmatprep.mubr.f32.mxu1 %v399_v51  ;;  %v1761_v43 = vpack.c.bf16 %v770_v42, %v769_v41  ;;  %v756_v47 = vld [vmem:[#allocation6 + $0x268] sm:$0xff] }
 0x137   :  { %528 = vmatmul.mubr.f32.gmra.mrb[20].mxu0 %v383_v53  ;;  %1748 = vmatpush3.bf16.msra.mxu1 %v1745_v36  ;;  %v754_v36 = vld [vmem:[#allocation6 + $0x258] sm:$0xff]  ;;  %v1733_v48 = vpack.c.bf16 %v756_v47, %v755_v44  ;;  %v740_v50 = vld [vmem:[#allocation6 + $0x1e8] sm:$0xff]  ;;  %v771_v53 = vld [vmem:[#allocation6 + $0x2e0] sm:$0xff] }
 0x138   :  { %532 = vmatprep.mubr.f32.mxu0 %v2016_v32  ;;  %v2027_v46 = vmax.f32 %v346_v54, 0.0  ;;  %v326_v56 = vadd.f32 %v1261_v55, %v325_v15  ;;  %v1262_v57 = vpop.f32.mrb[14].mxu0  ;;  %1720 = vmatpush3.bf16.msra.mxu0 %v1719_v49  ;;  %v749_v15 = vld [vmem:[#allocation6 + $0x230] sm:$0xff]  ;;  %v1729_v37 = vpack.c.bf16 %v754_v36, %v753_v35  ;;  %v739_v49 = vld [vmem:[#allocation6 + $0x1e0] sm:$0xff]  ;;  %v772_v54 = vld [vmem:[#allocation6 + $0x2e8] sm:$0xff] }
 0x139   :  { %v1263_v58 = vpop.f32.mrb[15].mxu0  ;;  %v400_v59 = vld [vmem:[#allocation2 + $0x32] sm:$0xff]  ;;  %1750 = vmatprep.subr.bf16.mxu1 %v1749_v14  ;;  %v1721_v18 = vpack.c.bf16 %v750_v16, %v749_v15  ;;  %v1735_v51 = vpack.c.bf16 %v740_v50, %v739_v49  ;;  %v1765_v55 = vpack.c.bf16 %v772_v54, %v771_v53 }
 0x13a   :  { %v384_v61 = vld [vmem:[#allocation2 + $0x30] sm:$0xff]  ;;  %378 = vst [vmem:[#allocation2 + $0x51] sm:$0xff] %v2027_v46  ;;  %v347_v62 = vadd.f32 %v1997_v52, %v326_v56  ;;  %v1264_v63 = vadd.f32 %v1263_v58, %v1262_v57  ;;  %1529 = vmatmul.mubr.f32.gmra.mrb[10].mxu1 %v400_v59  ;;  %v758_v57 = vld [vmem:[#allocation6 + $0x278] sm:$0xff] }
 0x13b   :  { %533 = vmatmul.mubr.f32.gmra.mrb[22].mxu0 %v384_v61  ;;  %1752 = vmatpush3.bf16.msra.mxu1 %v1749_v14  ;;  %v757_v56 = vld [vmem:[#allocation6 + $0x270] sm:$0xff]  ;;  %v742_v61 = vld [vmem:[#allocation6 + $0x1f8] sm:$0xff] }
 0x13c   :  { %537 = vmatprep.mubr.f32.mxu0 %v2022_v45  ;;  %v2032_v0 = vmax.f32 %v347_v62, 0.0  ;;  %v331_v1 = vadd.f32 %v2007_v10, %v1264_v63  ;;  %1722 = vmatprep.subr.bf16.mxu0 %v1721_v18  ;;  %v1737_v58 = vpack.c.bf16 %v758_v57, %v757_v56  ;;  %v741_v59 = vld [vmem:[#allocation6 + $0x1f0] sm:$0xff] }
 0x13d   :  { %v401_v2 = vld [vmem:[#allocation2 + $0x42] sm:$0xff]  ;;  %1724 = vmatpush3.bf16.msra.mxu0 %v1723_v21  ;;  %1754 = vmatprep.subr.bf16.mxu1 %v1753_v24  ;;  %v1739_v62 = vpack.c.bf16 %v742_v61, %v741_v59  ;;  %v773_v63 = vld [vmem:[#allocation6 + $0x2f0] sm:$0xff] }
 0x13e   :  { %v385_v3 = vld [vmem:[#allocation2 + $0x40] sm:$0xff]  ;;  %379 = vst [vmem:[#allocation2 + $0x61] sm:$0xff] %v2032_v0  ;;  %v348_v5 = vadd.f32 %v1997_v52, %v331_v1  ;;  %1531 = vmatprep.mubr.f32.mxu1 %v401_v2  ;;  %1726 = vmatprep.subr.bf16.mxu0 %v1725_v27  ;;  %v774_v1 = vld [vmem:[#allocation6 + $0x2f8] sm:$0xff] }
 0x13f   :  { %538 = vmatmul.mubr.f32.gmra.mrb[24].mxu0 %v385_v3  ;;  %1756 = vmatpush3.bf16.msra.mxu1 %v1753_v24  ;;  %v1769_v2 = vpack.c.bf16 %v774_v1, %v773_v63  ;;  %v1113_v3 = vld [vmem:[%s2174_s1] sm:$0xff] }
 0x140   :  { %542 = vmatprep.mubr.f32.mxu0 %v2027_v46  ;;  %v2038_v6 = vmax.f32 %v348_v5, 0.0  ;;  %1758 = vmatprep.subr.bf16.mxu1 %v1757_v34  ;;  %v1858_v5 = vmov 0  }
 0x141   :  { %v402_v7 = vld [vmem:[#allocation2 + $0x52] sm:$0xff]  ;;  %1728 = vmatpush3.bf16.msra.mxu0 %v1727_v30  ;;  %1780 = vset.pattern.permute.xlu0 %v1858_v5 }
 0x142   :  { %v386_v8 = vld [vmem:[#allocation2 + $0x50] sm:$0xff]  ;;  %380 = vst [vmem:[#allocation2 + $0x71] sm:$0xff] %v2038_v6  ;;  %1532 = vmatmul.mubr.f32.gmra.mrb[12].mxu1 %v402_v7  ;;  %1730 = vmatprep.subr.bf16.mxu0 %v1729_v37 }
 0x143   :  { %543 = vmatmul.mubr.f32.gmra.mrb[26].mxu0 %v386_v8  ;;  %1760 = vmatpush3.bf16.msra.mxu1 %v1757_v34 }
 0x144   :  { %547 = vmatprep.mubr.f32.mxu0 %v2032_v0  ;;  %1762 = vmatprep.subr.bf16.mxu1 %v1761_v43 }
 0x145   :  { %v403_v9 = vld [vmem:[#allocation2 + $0x62] sm:$0xff]  ;;  %1732 = vmatpush3.bf16.msra.mxu0 %v1731_v40  ;;  %1116 = vperm.xlu0 %1780, %v1113_v3  }
 0x146   :  { %v387_v10 = vld [vmem:[#allocation2 + $0x60] sm:$0xff]  ;;  %1534 = vmatprep.mubr.f32.mxu1 %v403_v9  ;;  %1734 = vmatprep.subr.bf16.mxu0 %v1733_v48 }
 0x147   :  { %548 = vmatmul.mubr.f32.gmra.mrb[28].mxu0 %v387_v10  ;;  %1764 = vmatpush3.bf16.msra.mxu1 %v1761_v43 }
 0x148   :  { %552 = vmatprep.mubr.f32.mxu0 %v2038_v6  ;;  %1766 = vmatprep.subr.bf16.mxu1 %v1765_v55 }
 0x149   :  { %v404_v52 = vld [vmem:[#allocation2 + $0x72] sm:$0xff]  ;;  %1736 = vmatpush3.bf16.msra.mxu0 %v1735_v51 }
 0x14a   :  { %v388_v11 = vld [vmem:[#allocation2 + $0x70] sm:$0xff]  ;;  %1535 = vmatmul.mubr.f32.gmra.mrb[14].mxu1 %v404_v52  ;;  %1738 = vmatprep.subr.bf16.mxu0 %v1737_v58 }
 0x14b   :  { %553 = vmatmul.mubr.f32.gmra.mrb[30].mxu0 %v388_v11  ;;  %1768 = vmatpush3.bf16.msra.mxu1 %v1765_v55 }
 0x14c   :  { %1770 = vmatprep.subr.bf16.mxu1 %v1769_v2 }
 0x14d   :  { %1740 = vmatpush3.bf16.msra.mxu0 %v1739_v62 }
 0x14f   :  { %1772 = vmatpush3.bf16.msra.mxu1 %v1769_v2 }
 0x202   :  { %v1321_v7 = vpop.f32.mrb[16].mxu0 }
 0x203   :  { %v1322_v8 = vpop.f32.mrb[17].mxu0 }
 0x204   :  { %v1323_v9 = vadd.f32 %v1322_v8, %v1321_v7 }
 0x205   :  { %v1527_v10 = vpop.f32.mrb[8].mxu1 }
 0x206   :  { %v1324_v52 = vpop.f32.mrb[18].mxu0  ;;  %v624_v11 = vpop.f32.mrb[9].mxu1 }
 0x207   :  { %v1325_v13 = vpop.f32.mrb[19].mxu0  ;;  %v625_v14 = vadd.f32 %v1323_v9, %v624_v11 }
 0x208   :  { %v1326_v15 = vadd.f32 %v1325_v13, %v1324_v52 }
 0x209   :  { %v670_v16 = vadd.f32 %v2049_v12, %v625_v14 }
 0x20a   :  { %v630_v18 = vadd.f32 %v1527_v10, %v1326_v15  ;;  %v1327_v19 = vpop.f32.mrb[20].mxu0 }
 0x20b   :  { %v1328_v20 = vpop.f32.mrb[21].mxu0  ;;  %v678_v21 = vmax.f32 %v670_v16, 0.0 }
 0x20c   :  { %v671_v22 = vadd.f32 %v2049_v12, %v630_v18  ;;  %v1329_v23 = vadd.f32 %v1328_v20, %v1327_v19 }
 0x20d   :  { %v2054_v24 = vadd.f32 %v678_v21, %v2000_v60  ;;  %v1530_v26 = vpop.f32.mrb[10].mxu1 }
 0x20e   :  { %v679_v25 = vmax.f32 %v671_v22, 0.0  ;;  %v1330_v27 = vpop.f32.mrb[22].mxu0  ;;  %v634_v28 = vpop.f32.mrb[11].mxu1 }
 0x20f   :  { %v1331_v29 = vpop.f32.mrb[23].mxu0  ;;  %694 = vst [vmem:[#allocation2 + $0x1] sm:$0xff] %v2054_v24  ;;  %v635_v31 = vadd.f32 %v1329_v23, %v634_v28  ;;  %839 = vmatprep.mubr.f32.mxu0 %v2054_v24 }
 0x210   :  { %v2058_v30 = vadd.f32 %v679_v25, %v2005_v4  ;;  %v1332_v33 = vadd.f32 %v1331_v29, %v1330_v27 }
 0x211   :  { %v672_v34 = vadd.f32 %v2049_v12, %v635_v31  ;;  %v2102_v31 = vld [vmem:[%s2178_s5 + $0x1] ss:$0 sm:$0xff]  ;;  %s1859_s5 = smov [#allocation8]  }
 0x212   :  { %695 = vst [vmem:[#allocation2 + $0x11] sm:$0xff] %v2058_v30  ;;  %v640_v60 = vadd.f32 %v1530_v26, %v1332_v33  ;;  %v1333_v35 = vpop.f32.mrb[24].mxu0  ;;  %s1195_s22 = sshll.u32 %s1859_s5, 4  ;;  %s1196_s22 = int_to_ptr.vmem [resolvable:$true] %s1195_s22 }
 0x213   :  { %v1334_v36 = vpop.f32.mrb[25].mxu0  ;;  %v680_v37 = vmax.f32 %v672_v34, 0.0  ;;  %s1825_s23 = scalar_lea.vmem %s1196_s22, 256  ;;  %p1830_p3 = scmp.lt.s32.totalorder %s1196_s22, %s1196_s22 }
 0x214   :  { %v673_v38 = vadd.f32 %v2049_v12, %v640_v60  ;;  %v1335_v39 = vadd.f32 %v1334_v36, %v1333_v35  ;;  %p1826_p2 = scmp.ne.s32.totalorder %s1196_s22, %s1825_s23  ;;  %p1831_p4 = scmp.lt.s32.totalorder %s1825_s23, %s1825_s23 }
 0x215   :  { %v2065_v40 = vadd.f32 %v680_v37, %v2011_v17  ;;  %v1533_v41 = vpop.f32.mrb[12].mxu1 }
 0x216   :  { %v681_v4 = vmax.f32 %v673_v38, 0.0  ;;  %v1336_v42 = vpop.f32.mrb[26].mxu0  ;;  %v644_v43 = vpop.f32.mrb[13].mxu1  ;;  %v718_v47 = vld [vmem:[#allocation2 + $0x2] sm:$0xff]  ;;  %p1832_p5 = por %p1831_p4, %p1830_p3 }
 0x217   :  { %v1337_v44 = vpop.f32.mrb[27].mxu0  ;;  %v702_v48 = vld [vmem:[#allocation2] sm:$0xff]  ;;  %696 = vst [vmem:[#allocation2 + $0x21] sm:$0xff] %v2065_v40  ;;  %v645_v50 = vadd.f32 %v1335_v39, %v644_v43  ;;  %1569 = vmatprep.mubr.f32.mxu1 %v718_v47 }
 0x218   :  { %v2069_v49 = vadd.f32 %v681_v4, %v2016_v32  ;;  %v1338_v51 = vadd.f32 %v1337_v44, %v1336_v42  ;;  %840 = vmatmul.mubr.f32.vlgmr.msra.gmra.mrb[32].mxu0 %v702_v48  ;;  %p1833_p6 = pnand %p1832_p5, %p1826_p2 }
 0x219   :  { %844 = vmatprep.mubr.f32.mxu0 %v2058_v30  ;;  %v719_v17 = vld [vmem:[#allocation2 + $0x12] sm:$0xff]  ;;  %v674_v53 = vadd.f32 %v2049_v12, %v645_v50 }
 0x21a   :  { %697 = vst [vmem:[#allocation2 + $0x31] sm:$0xff] %v2069_v49  ;;  %v650_v54 = vadd.f32 %v1533_v41, %v1338_v51  ;;  %v1339_v55 = vpop.f32.mrb[28].mxu0  ;;  %1570 = vmatmul.mubr.f32.vlgmr.msra.gmra.mrb[16].mxu1 %v719_v17  ;;  %v703_v57 = vld [vmem:[#allocation2 + $0x10] sm:$0xff] }
 0x21b   :  { %v1340_v56 = vpop.f32.mrb[29].mxu0  ;;  %v682_v58 = vmax.f32 %v674_v53, 0.0 }
 0x21c   :  { %v675_v32 = vadd.f32 %v2049_v12, %v650_v54  ;;  %v1341_v59 = vadd.f32 %v1340_v56, %v1339_v55  ;;  %845 = vmatmul.mubr.f32.gmra.mrb[34].mxu0 %v703_v57 }
 0x21d   :  { %849 = vmatprep.mubr.f32.mxu0 %v2065_v40  ;;  %v2077_v61 = vadd.f32 %v682_v58, %v2022_v45  ;;  %v1536_v63 = vpop.f32.mrb[14].mxu1  ;;  %v2109_v58 = vpop.permute.xlu0 %1116 }
 0x21e   :  { %v683_v62 = vmax.f32 %v675_v32, 0.0  ;;  %v1342_v1 = vpop.f32.mrb[30].mxu0  ;;  %v654_v2 = vpop.f32.mrb[15].mxu1  ;;  %v720_v5 = vld [vmem:[#allocation2 + $0x22] sm:$0xff] }
 0x21f   :  { %v1343_v3 = vpop.f32.mrb[31].mxu0  ;;  %v704_v7 = vld [vmem:[#allocation2 + $0x20] sm:$0xff]  ;;  %698 = vst [vmem:[#allocation2 + $0x41] sm:$0xff] %v2077_v61  ;;  %v655_v9 = vadd.f32 %v1341_v59, %v654_v2  ;;  %1572 = vmatprep.mubr.f32.mxu1 %v720_v5 }
 0x220   :  { %v2081_v8 = vadd.f32 %v683_v62, %v2027_v46  ;;  %v1344_v10 = vadd.f32 %v1343_v3, %v1342_v1  ;;  %850 = vmatmul.mubr.f32.gmra.mrb[36].mxu0 %v704_v7  ;;  %v1119_v7 = vrot.slane %v2109_v58, 2 }
 0x221   :  { %854 = vmatprep.mubr.f32.mxu0 %v2069_v49  ;;  %v721_v45 = vld [vmem:[#allocation2 + $0x32] sm:$0xff]  ;;  %v676_v52 = vadd.f32 %v2049_v12, %v655_v9  ;;  %v1120_v9 = vrot.slane %v2109_v58, 3 }
 0x222   :  { %699 = vst [vmem:[#allocation2 + $0x51] sm:$0xff] %v2081_v8  ;;  %v660_v11 = vadd.f32 %v1536_v63, %v1344_v10  ;;  %1573 = vmatmul.mubr.f32.gmra.mrb[18].mxu1 %v721_v45  ;;  %v705_v13 = vld [vmem:[#allocation2 + $0x30] sm:$0xff] }
 0x223   :  { %v684_v14 = vmax.f32 %v676_v52, 0.0 }
 0x224   :  { %v677_v15 = vadd.f32 %v2049_v12, %v660_v11  ;;  %855 = vmatmul.mubr.f32.gmra.mrb[38].mxu0 %v705_v13 }
 0x225   :  { %859 = vmatprep.mubr.f32.mxu0 %v2077_v61  ;;  %v2089_v46 = vadd.f32 %v684_v14, %v2032_v0 }
 0x226   :  { %v685_v16 = vmax.f32 %v677_v15, 0.0  ;;  %v722_v18 = vld [vmem:[#allocation2 + $0x42] sm:$0xff] }
 0x227   :  { %v706_v19 = vld [vmem:[#allocation2 + $0x40] sm:$0xff]  ;;  %700 = vst [vmem:[#allocation2 + $0x61] sm:$0xff] %v2089_v46  ;;  %1575 = vmatprep.mubr.f32.mxu1 %v722_v18 }
 0x228   :  { %v2093_v20 = vadd.f32 %v685_v16, %v2038_v6  ;;  %860 = vmatmul.mubr.f32.gmra.mrb[40].mxu0 %v706_v19  ;;  %v1122_v19 = vrot.slane %v2109_v58, 5 }
 0x229   :  { %864 = vmatprep.mubr.f32.mxu0 %v2081_v8  ;;  %v723_v21 = vld [vmem:[#allocation2 + $0x52] sm:$0xff] }
 0x22a   :  { %701 = vst [vmem:[#allocation2 + $0x71] sm:$0xff] %v2093_v20  ;;  %1576 = vmatmul.mubr.f32.gmra.mrb[20].mxu1 %v723_v21  ;;  %v707_v12 = vld [vmem:[#allocation2 + $0x50] sm:$0xff] }
 0x22c   :  { %865 = vmatmul.mubr.f32.gmra.mrb[42].mxu0 %v707_v12 }
 0x22d   :  { %869 = vmatprep.mubr.f32.mxu0 %v2089_v46 }
 0x22e   :  { %v724_v0 = vld [vmem:[#allocation2 + $0x62] sm:$0xff] }
 0x22f   :  { %v708_v22 = vld [vmem:[#allocation2 + $0x60] sm:$0xff]  ;;  %1578 = vmatprep.mubr.f32.mxu1 %v724_v0 }
 0x230   :  { %870 = vmatmul.mubr.f32.gmra.mrb[44].mxu0 %v708_v22 }
 0x231   :  { %874 = vmatprep.mubr.f32.mxu0 %v2093_v20  ;;  %v725_v6 = vld [vmem:[#allocation2 + $0x72] sm:$0xff] }
 0x232   :  { %1579 = vmatmul.mubr.f32.gmra.mrb[22].mxu1 %v725_v6  ;;  %v709_v23 = vld [vmem:[#allocation2 + $0x70] sm:$0xff] }
 0x234   :  { %875 = vmatmul.mubr.f32.gmra.mrb[46].mxu0 %v709_v23 }
 0x2eb   :  { %v1401_v25 = vpop.f32.mrb[32].mxu0 }
 0x2ec   :  { %v1402_v26 = vpop.f32.mrb[33].mxu0 }
 0x2ed   :  { %v1403_v27 = vadd.f32 %v1402_v26, %v1401_v25  ;;  %v1571_v28 = vpop.f32.mrb[16].mxu1 }
 0x2ee   :  { %v946_v29 = vpop.f32.mrb[17].mxu1 }
 0x2ef   :  { %v947_v33 = vadd.f32 %v1403_v27, %v946_v29  ;;  %v1404_v34 = vpop.f32.mrb[34].mxu0 }
 0x2f0   :  { %v1405_v60 = vpop.f32.mrb[35].mxu0 }
 0x2f1   :  { %v993_v35 = vadd.f32 %v2102_v31, %v947_v33  ;;  %v1406_v36 = vadd.f32 %v1405_v60, %v1404_v34 }
 0x2f3   :  { %v1001_v37 = vmax.f32 %v993_v35, 0.0  ;;  %v952_v38 = vadd.f32 %v1571_v28, %v1406_v36  ;;  %v1407_v39 = vpop.f32.mrb[36].mxu0  ;;  %v1123_v28 = vrot.slane %v2109_v58, 6 }
 0x2f4   :  { %v1408_v4 = vpop.f32.mrb[37].mxu0 }
 0x2f5   :  { %v1009_v41 = vadd.f32 %v1001_v37, %v2054_v24  ;;  %v994_v42 = vadd.f32 %v2102_v31, %v952_v38  ;;  %v1409_v43 = vadd.f32 %v1408_v4, %v1407_v39  ;;  %v1574_v44 = vpop.f32.mrb[18].mxu1  ;;  %v1118_v24 = vrot.slane %v2109_v58, 1 }
 0x2f6   :  { %v956_v47 = vpop.f32.mrb[19].mxu1 }
 0x2f7   :  { %v1017_v48 = vrot.slane %v1009_v41, 4  ;;  %v1002_v50 = vmax.f32 %v994_v42, 0.0  ;;  %v957_v51 = vadd.f32 %v1409_v43, %v956_v47  ;;  %v1410_v17 = vpop.f32.mrb[38].mxu0 }
 0x2f8   :  { %v1411_v53 = vpop.f32.mrb[39].mxu0 }
 0x2f9   :  { %v1018_v54 = vmax.f32 %v1009_v41, %v1017_v48  ;;  %v1066_v55 = vadd.f32 %v1017_v48, %v1009_v41  ;;  %v1010_v56 = vadd.f32 %v1002_v50, %v2058_v30  ;;  %v995_v57 = vadd.f32 %v2102_v31, %v957_v51 }
 0x2fa   :  { %v1412_v32 = vadd.f32 %v1411_v53, %v1410_v17  ;;  %v1121_v30 = vrot.slane %v2109_v58, 4 }
 0x2fb   :  { %v1019_v59 = vrot.slane %v1018_v54, 2  ;;  %v1067_v62 = vrot.slane %v1066_v55, 2  ;;  %v1023_v63 = vrot.slane %v1010_v56, 4  ;;  %v1003_v1 = vmax.f32 %v995_v57, 0.0  ;;  %v1413_v2 = vpop.f32.mrb[40].mxu0 }
 0x2fc   :  { %v962_v3 = vadd.f32 %v1574_v44, %v1412_v32  ;;  %v1414_v5 = vpop.f32.mrb[41].mxu0 }
 0x2fd   :  { %v1020_v10 = vmax.f32 %v1018_v54, %v1019_v59  ;;  %v1068_v45 = vadd.f32 %v1067_v62, %v1066_v55  ;;  %v1024_v52 = vmax.f32 %v1010_v56, %v1023_v63  ;;  %v1072_v11 = vadd.f32 %v1023_v63, %v1010_v56  ;;  %v1577_v13 = vpop.f32.mrb[20].mxu1 }
 0x2fe   :  { %v1011_v14 = vadd.f32 %v1003_v1, %v2065_v40  ;;  %v996_v15 = vadd.f32 %v2102_v31, %v962_v3  ;;  %v1415_v16 = vadd.f32 %v1414_v5, %v1413_v2  ;;  %v966_v18 = vpop.f32.mrb[21].mxu1 }
 0x2ff   :  { %v1021_v21 = vrot.slane %v1020_v10, 1  ;;  %v1069_v12 = vrot.slane %v1068_v45, 1  ;;  %v1025_v0 = vrot.slane %v1024_v52, 2  ;;  %v1073_v22 = vrot.slane %v1072_v11, 2  ;;  %v1416_v6 = vpop.f32.mrb[42].mxu0 }
 0x300   :  { %v1029_v23 = vrot.slane %v1011_v14, 4  ;;  %v1004_v25 = vmax.f32 %v996_v15, 0.0  ;;  %v967_v26 = vadd.f32 %v1415_v16, %v966_v18  ;;  %v1417_v27 = vpop.f32.mrb[43].mxu0 }
 0x301   :  { %v2119_v29 = vmax.f32 %v1020_v10, %v1021_v21  ;;  %v1070_v40 = vadd.f32 %v1069_v12, %v1068_v45  ;;  %v1026_v33 = vmax.f32 %v1024_v52, %v1025_v0  ;;  %v1074_v34 = vadd.f32 %v1073_v22, %v1072_v11 }
 0x302   :  { %v1030_v60 = vmax.f32 %v1011_v14, %v1029_v23  ;;  %v1078_v35 = vadd.f32 %v1029_v23, %v1011_v14  ;;  %v1012_v36 = vadd.f32 %v1004_v25, %v2069_v49  ;;  %v997_v37 = vadd.f32 %v2102_v31, %v967_v26 }
 0x303   :  { %v1027_v38 = vrot.slane %v1026_v33, 1  ;;  %v1075_v39 = vrot.slane %v1074_v34, 1  ;;  %v1418_v4 = vadd.f32 %v1417_v27, %v1416_v6  ;;  %v2124_v41 = vmul.f32 %v2109_v58, %v1070_v40  ;;  %v1419_v42 = vpop.f32.mrb[44].mxu0 }
 0x304   :  { %v1031_v43 = vrot.slane %v1030_v60, 2  ;;  %v1079_v44 = vrot.slane %v1078_v35, 2  ;;  %v1035_v47 = vrot.slane %v1012_v36, 4  ;;  %v1005_v48 = vmax.f32 %v997_v37, 0.0  ;;  %v1420_v50 = vpop.f32.mrb[45].mxu0 }
 0x305   :  { %v1028_v51 = vmax.f32 %v1026_v33, %v1027_v38  ;;  %v1076_v17 = vadd.f32 %v1075_v39, %v1074_v34  ;;  %v972_v53 = vadd.f32 %v1577_v13, %v1418_v4  ;;  %v1421_v54 = vadd.f32 %v1420_v50, %v1419_v42  ;;  %v1580_v55 = vpop.f32.mrb[22].mxu1 }
 0x306   :  { %v1032_v49 = vmax.f32 %v1030_v60, %v1031_v43  ;;  %v1080_v56 = vadd.f32 %v1079_v44, %v1078_v35  ;;  %v1036_v57 = vmax.f32 %v1012_v36, %v1035_v47  ;;  %v1084_v32 = vadd.f32 %v1035_v47, %v1012_v36  ;;  %v976_v59 = vpop.f32.mrb[23].mxu1 }
 0x307   :  { %v1013_v62 = vadd.f32 %v1005_v48, %v2077_v61  ;;  %v998_v63 = vadd.f32 %v2102_v31, %v972_v53  ;;  %v2128_v1 = vmul.f32 %v1118_v24, %v1076_v17  ;;  %v977_v2 = vadd.f32 %v1421_v54, %v976_v59  ;;  %v1422_v3 = vpop.f32.mrb[46].mxu0 }
 0x308   :  { %v1033_v5 = vrot.slane %v1032_v49, 1  ;;  %v1081_v10 = vrot.slane %v1080_v56, 1  ;;  %v1037_v45 = vrot.slane %v1036_v57, 2  ;;  %v1085_v52 = vrot.slane %v1084_v32, 2  ;;  %v1423_v11 = vpop.f32.mrb[47].mxu0 }
 0x309   :  { %v1041_v13 = vrot.slane %v1013_v62, 4  ;;  %v1006_v14 = vmax.f32 %v998_v63, 0.0  ;;  %v1172_v15 = vrot.slane %v2128_v1, 7  ;;  %v999_v16 = vadd.f32 %v2102_v31, %v977_v2 }
 0x30a   :  { %v1034_v61 = vmax.f32 %v1032_v49, %v1033_v5  ;;  %v1082_v18 = vadd.f32 %v1081_v10, %v1080_v56  ;;  %v1038_v21 = vmax.f32 %v1036_v57, %v1037_v45  ;;  %v1086_v24 = vadd.f32 %v1085_v52, %v1084_v32 }
 0x30b   :  { %v1042_v12 = vmax.f32 %v1013_v62, %v1041_v13  ;;  %v1090_v0 = vadd.f32 %v1041_v13, %v1013_v62  ;;  %v1014_v22 = vadd.f32 %v1006_v14, %v2081_v8  ;;  %v1007_v6 = vmax.f32 %v999_v16, 0.0 }
 0x30c   :  { %v1039_v23 = vrot.slane %v1038_v21, 1  ;;  %v1087_v25 = vrot.slane %v1086_v24, 1  ;;  %v1135_v26 = vmul.f32 %v1119_v7, %v1082_v18  ;;  %v1424_v27 = vadd.f32 %v1423_v11, %v1422_v3 }
 0x30d   :  { %v1043_v40 = vrot.slane %v1042_v12, 2  ;;  %v1091_v33 = vrot.slane %v1090_v0, 2  ;;  %v1047_v34 = vrot.slane %v1014_v22, 4  ;;  %v1015_v60 = vadd.f32 %v1007_v6, %v2089_v46 }
 0x30e   :  { %v1040_v35 = vmax.f32 %v1038_v21, %v1039_v23  ;;  %v1088_v36 = vadd.f32 %v1087_v25, %v1086_v24  ;;  %v1174_v37 = vrot.slane %v1135_v26, 6  ;;  %v982_v38 = vadd.f32 %v1580_v55, %v1424_v27 }
 0x30f   :  { %v1044_v39 = vmax.f32 %v1042_v12, %v1043_v40  ;;  %v1092_v4 = vadd.f32 %v1091_v33, %v1090_v0  ;;  %v1048_v8 = vmax.f32 %v1014_v22, %v1047_v34  ;;  %v1096_v42 = vadd.f32 %v1047_v34, %v1014_v22 }
 0x310   :  { %v1136_v43 = vmul.f32 %v1120_v9, %v1088_v36  ;;  %v1053_v44 = vrot.slane %v1015_v60, 4  ;;  %v1000_v7 = vadd.f32 %v2102_v31, %v982_v38  ;;  %v1150_v47 = vsel %vm1149_vm0, %v1028_v51, %v2119_v29 }
 0x311   :  { %v1045_v48 = vrot.slane %v1044_v39, 1  ;;  %v1093_v46 = vrot.slane %v1092_v4, 1  ;;  %v1049_v50 = vrot.slane %v1048_v8, 2  ;;  %v1097_v17 = vrot.slane %v1096_v42, 2 }
 0x312   :  { %v1054_v53 = vmax.f32 %v1015_v60, %v1053_v44  ;;  %v1102_v54 = vadd.f32 %v1053_v44, %v1015_v60  ;;  %v1008_v55 = vmax.f32 %v1000_v7, 0.0  ;;  %v1152_v49 = vsel %vm1151_vm1, %v1034_v61, %v1150_v47 }
 0x313   :  { %v1046_v56 = vmax.f32 %v1044_v39, %v1045_v48  ;;  %v1094_v57 = vadd.f32 %v1093_v46, %v1092_v4  ;;  %v1050_v32 = vmax.f32 %v1048_v8, %v1049_v50  ;;  %v1098_v9 = vadd.f32 %v1097_v17, %v1096_v42 }
 0x314   :  { %v1055_v59 = vrot.slane %v1054_v53, 2  ;;  %v1103_v62 = vrot.slane %v1102_v54, 2  ;;  %v1016_v31 = vadd.f32 %v1008_v55, %v2093_v20  ;;  %v1154_v29 = vsel %vm1153_vm2, %v1040_v35, %v1152_v49 }
 0x315   :  { %v1099_v51 = vrot.slane %v1098_v9, 1  ;;  %v1051_v63 = vrot.slane %v1050_v32, 1  ;;  %v1137_v1 = vmul.f32 %v1121_v30, %v1094_v57  ;;  %v1156_v2 = vsel %vm1155_vm3, %v1046_v56, %v1154_v29 }
 0x316   :  { %v1056_v3 = vmax.f32 %v1054_v53, %v1055_v59  ;;  %v1104_v5 = vadd.f32 %v1103_v62, %v1102_v54  ;;  %v1059_v10 = vrot.slane %v1016_v31, 4  ;;  %v1173_v45 = vsel %vm1149_vm0, %v1172_v15, %v2124_v41 }
 0x317   :  { %v1100_v52 = vadd.f32 %v1099_v51, %v1098_v9  ;;  %v1052_v11 = vmax.f32 %v1050_v32, %v1051_v63  ;;  %v1175_v13 = vsel %vm1151_vm1, %v1174_v37, %v1173_v45  ;;  %v1176_v20 = vrot.slane %v1136_v43, 5 }
 0x318   :  { %v1105_v14 = vrot.slane %v1104_v5, 1  ;;  %v1060_v16 = vmax.f32 %v1016_v31, %v1059_v10  ;;  %v1108_v61 = vadd.f32 %v1059_v10, %v1016_v31  ;;  %v1057_v18 = vrot.slane %v1056_v3, 1 }
 0x319   :  { %v1138_v30 = vmul.f32 %v1122_v19, %v1100_v52  ;;  %v1158_v21 = vsel %vm1157_vm4, %v1052_v11, %v1156_v2  ;;  %v1177_v24 = vsel %vm1153_vm2, %v1176_v20, %v1175_v13  ;;  %v1178_v12 = vrot.slane %v1137_v1, 4 }
 0x31a   :  { %v1106_v0 = vadd.f32 %v1105_v14, %v1104_v5  ;;  %v1109_v22 = vrot.slane %v1108_v61, 2  ;;  %v1058_v41 = vmax.f32 %v1056_v3, %v1057_v18  ;;  %v1061_v15 = vrot.slane %v1060_v16, 2 }
 0x31b   :  { %v1179_v6 = vsel %vm1155_vm3, %v1178_v12, %v1177_v24  ;;  %v1180_v23 = vrot.slane %v1138_v30, 3  ;;  %v1124_v37 = vrot.slane %v2109_v58, 7 }
 0x31c   :  { %v1062_v25 = vmax.f32 %v1060_v16, %v1061_v15  ;;  %v1110_v26 = vadd.f32 %v1109_v22, %v1108_v61  ;;  %v1139_v27 = vmul.f32 %v1123_v28, %v1106_v0  ;;  %v1160_v40 = vsel %vm1159_vm5, %v1058_v41, %v1158_v21 }
 0x31d   :  { %v1181_v19 = vsel %vm1157_vm4, %v1180_v23, %v1179_v6 }
 0x31e   :  { %v1063_v33 = vrot.slane %v1062_v25, 1  ;;  %v1111_v34 = vrot.slane %v1110_v26, 1  ;;  %v1182_v60 = vrot.slane %v1139_v27, 2 }
 0x320   :  { %v1064_v35 = vmax.f32 %v1062_v25, %v1063_v33  ;;  %v1112_v36 = vadd.f32 %v1111_v34, %v1110_v26  ;;  %v1183_v38 = vsel %vm1159_vm5, %v1182_v60, %v1181_v19 }
 0x322   :  { %v1140_v39 = vmul.f32 %v1124_v37, %v1112_v36  ;;  %v1162_v4 = vsel %vm1161_vm6, %v1064_v35, %v1160_v40 }
 0x323   :  { %1187 = vst [vmem:[#allocation8] sm:$0xff] %v1162_v4 }
 0x324   :  { %v1184_v28 = vrot.slane %v1140_v39, 1 }
 0x326   :  { %v1185_v8 = vsel %vm1161_vm6, %v1184_v28, %v1183_v38 }
 0x327   :  { %1188 = vst [vmem:[#allocation8 + $0x8] sm:$0xff] %v1185_v8 }
 0x328   :  { %1836 = shalt.err (!%p1833_p6)
}
 0x329   :  { %s1837_s26 = scalar_lea.hbm %s2179_s6, 256 }
 0x32a   :  { %p1838_p7 = scmp.ne.s32.totalorder %s2179_s6, %s1837_s26  ;;  %p1841_p8 = scmp.lt.u32.totalorder %s1837_s26, %s2179_s6 }
 0x32c   :  { %p1843_p9 = pnand %p1841_p8, %p1838_p7 }
 0x32e   :  { %1846 = shalt.err (!%p1843_p9)
}
 0x32f   :  { %1198 = dma.vmem_to_hbm [thread:$0]  %s1196_s22, 256, %s2179_s6, [#allocation5]  }
 0x330   :  { %1851 = dma.done.wait [#allocation5], 256  }
 0x331   :  { %1852 = vsyncadd [#allocation5], 4294967040 }
 0x332   :  { %1202 = vsyncpa [#allocation4], 1 }
 0x333   :  { %1203 = vsyncpa [#allocation7], 1 }
 0x334   :  { %1204 = vsyncpa [#allocation5], 1 }

</bundles_post_ra>
